<compile_context>
chip_gen: v7x
topology: tpu7x:2x2x1
jax: 0.10.0
libtpu: 0.0.40
codegen_flags: <defaults>
</compile_context>

<pallas_src>
import functools

import jax
import jax.numpy as jnp
from jax.experimental import pallas as pl
from jax.experimental.pallas import tpu as pltpu

_NEG_SENTINEL = -1e30
_POS_SENTINEL = 1e30


def _nca_kernel(tcol_ref, trow_ref, xblk_ref, xfullT_ref, loss_ref, *,
                alpha, k, tm, n_real):
    pid = pl.program_id(0)

    # --- similarity slab: (TM, N_pad) = x_block @ x_full^T, NN MXU matmul, f32 acc ---
    sim = jnp.dot(xblk_ref[...], xfullT_ref[...],
                  preferred_element_type=jnp.float32)         # (TM, N_pad) f32
    n_pad = sim.shape[1]

    # --- masks from broadcastable (TM,1)/(1,N_pad) vectors (no int32 slabs) ---
    tcol = tcol_ref[...]                                      # (TM, 1)   int32
    trow = trow_ref[...]                                      # (1, N_pad) int32
    row_ids = pid * tm + jax.lax.broadcasted_iota(jnp.int32, (tm, 1), 0)   # (TM, 1)
    col_ids = jax.lax.broadcasted_iota(jnp.int32, (1, n_pad), 1)           # (1, N_pad)

    same = tcol == trow                                       # (TM, N_pad) bool
    eye = row_ids == col_ids                                  # (TM, N_pad) bool
    valid_col = col_ids < n_real                              # (1, N_pad) bool
    valid_row = row_ids < n_real                              # (TM, 1) bool

    pos_mask = same & jnp.logical_not(eye) & valid_col        # same label, off-diagonal
    neg_mask = jnp.logical_not(same) & valid_col              # different label

    # --- per-row base = (min + max)/2 over real columns (diagonal included) ---
    row_max = jnp.max(jnp.where(valid_col, sim, _NEG_SENTINEL), axis=-1, keepdims=True)
    row_min = jnp.min(jnp.where(valid_col, sim, _POS_SENTINEL), axis=-1, keepdims=True)
    base = 0.5 * (row_min + row_max)                          # (TM, 1)

    # --- positive logit: one base-shifted slab -> exp -> masked lane-sum ---
    # (|sim| <= ~1 after normalization, so exp inputs are bounded by ~2*alpha)
    shifted = alpha * (base - sim)                            # (TM, N_pad)
    pos_logit = jnp.sum(jnp.where(pos_mask, jnp.exp(shifted), 0.0),
                        axis=-1, keepdims=True)               # (TM, 1)

    # --- negative logit: top-K via non-destructive threshold sweep ---
    work0 = jnp.where(neg_mask, sim, _NEG_SENTINEL)           # (TM, N_pad), read-only
    thr0 = jnp.full((tm, 1), _POS_SENTINEL, jnp.float32)
    acc0 = jnp.zeros((tm, 1), jnp.float32)

    def body(_, carry):
        thr, acc = carry
        # max of values strictly below the running threshold == next distinct value
        m = jnp.max(jnp.where(work0 < thr, work0, _NEG_SENTINEL),
                    axis=-1, keepdims=True)                   # one XLU lane reduction
        valid = m > (_NEG_SENTINEL * 0.5)                     # row still has negatives
        arg = jnp.where(valid, alpha * (base - m), 0.0)       # keep exp input finite
        acc = acc + jnp.where(valid, jnp.exp(arg), 0.0)
        return m, acc

    _, neg_logit = jax.lax.fori_loop(0, k, body, (thr0, acc0),
                                     unroll=min(k, 8))        # (TM, 1)

    # --- per-row loss; padded rows forced to 0 (mean taken in the wrapper) ---
    # Rows with no positives give -log(0) = inf, matching the reference semantics.
    ratio = pos_logit / (pos_logit + neg_logit)
    loss_ref[...] = jnp.where(valid_row, -jnp.log(ratio), 0.0)


def _pick_tm(tm, n_pad, d, itemsize):
    """Row-tile: multiple of 8, divides n_pad, keeps the slab set inside budget."""
    tm = int(min(tm, n_pad))
    tm = max(8, (tm // 8) * 8)
    if n_pad % tm:
        tm = 128                                    # n_pad is always a multiple of 128
    # ~6 live (TM, N_pad) f32 slabs + resident (D, N_pad) RHS inside a conservative
    # per-core budget (v7x has 64 MiB VMEM/TC and megacore duplicates the RHS).
    budget = 48 * (1 << 20)
    while tm > 8 and tm % 16 == 0 and (6 * tm * n_pad * 4 + d * n_pad * itemsize) > budget:
        tm //= 2
    return tm


def nca_loss_pallas(inputs, targets, alpha=16.0, k=32, *, tm=128, mxu_bf16=True):
    """Pallas-TPU NCA loss. inputs: (N, D) float, targets: (N,) int labels."""
    n, d = inputs.shape
    x = inputs.astype(jnp.float32)

    # Hoisted row-wise L2 normalization (matches torch normalize()).
    norm = jnp.sqrt(jnp.sum(x * x, axis=-1, keepdims=True))
    xn = x / jnp.maximum(norm, 1e-12)

    # Pad rows to a lane-dense multiple of 128; padded rows: zero features, label -1.
    n_pad = ((n + 127) // 128) * 128
    pad_rows = n_pad - n
    xn_p = jnp.pad(xn, ((0, pad_rows), (0, 0)))
    labels = jnp.asarray(targets).astype(jnp.int32)
    labels_p = jnp.pad(labels, (0, pad_rows), constant_values=-1)
    tcol = labels_p.reshape(n_pad, 1)
    trow = labels_p.reshape(1, n_pad)

    # bf16 operands for the MXU (f32 accumulate); elementwise math stays f32 in-kernel.
    mat_dtype = jnp.bfloat16 if mxu_bf16 else jnp.float32
    itemsize = jnp.dtype(mat_dtype).itemsize
    xm = xn_p.astype(mat_dtype)                       # (N_pad, D)  LHS row blocks
    xm_t = jnp.transpose(xm)                          # (D, N_pad)  resident RHS (once, in XLA)

    tm = _pick_tm(tm, n_pad, d, itemsize)
    k_eff = int(min(k, n))
    num_blocks = n_pad // tm

    # Explicit VMEM budget: resident single-buffered RHS + label row, double-buffered
    # row-block stream, and ~6 live (TM, N_pad) f32 slabs; capped for v7x (64 MiB/TC).
    resident_bytes = d * n_pad * itemsize + n_pad * 4
    stream_bytes = 2 * (tm * d * itemsize + tm * 4 + tm * 4)
    slab_bytes = 6 * tm * n_pad * 4
    vmem_limit = int(min(max(int(1.5 * (resident_bytes + stream_bytes + slab_bytes)),
                             32 * (1 << 20)),
                         56 * (1 << 20)))

    kernel = functools.partial(_nca_kernel, alpha=float(alpha), k=k_eff,
                               tm=tm, n_real=n)

    cost = pl.CostEstimate(
        flops=int(2 * n_pad * n_pad * d),
        transcendentals=int(n_pad * n_pad + k_eff * n_pad),
        bytes_accessed=int(num_blocks * (d * n_pad * itemsize + n_pad * 4)   # RHS reuse
                           + n_pad * d * itemsize                            # LHS stream
                           + 2 * n_pad * 4                                   # labels
                           + n_pad * 4),                                     # output
    )

    per_row = pl.pallas_call(
        kernel,
        out_shape=jax.ShapeDtypeStruct((n_pad, 1), jnp.float32),
        grid_spec=pltpu.PrefetchScalarGridSpec(
            num_scalar_prefetch=0,
            grid=(num_blocks,),
            in_specs=[
                pl.BlockSpec((tm, 1), lambda i: (i, 0)),          # block row labels
                pl.BlockSpec((1, n_pad), lambda i: (0, 0),
                             pipeline_mode=pl.Buffered(1)),       # all labels (resident)
                pl.BlockSpec((tm, d), lambda i: (i, 0)),          # row block (LHS)
                pl.BlockSpec((d, n_pad), lambda i: (0, 0),
                             pipeline_mode=pl.Buffered(1)),       # full matrix^T (resident)
            ],
            out_specs=pl.BlockSpec((tm, 1), lambda i: (i, 0)),
        ),
        compiler_params=pltpu.CompilerParams(
            dimension_semantics=("parallel",),
            vmem_limit_bytes=vmem_limit),
        cost_estimate=cost,
    )(tcol, trow, xm, xm_t)

    return jnp.sum(per_row) / n


def nca_loss_ref(inputs, targets, alpha=16.0, k=32, *, mxu_bf16=True):
    """Pure-JAX reference (mirrors the PyTorch forward, balanced classes)."""
    x = inputs.astype(jnp.float32)
    n = x.shape[0]
    xn = x / jnp.maximum(jnp.linalg.norm(x, axis=1, keepdims=True), 1e-12)
    xm = xn.astype(jnp.bfloat16) if mxu_bf16 else xn
    sim = jnp.matmul(xm, xm.T, preferred_element_type=jnp.float32).astype(jnp.float32)
    same = targets[:, None] == targets[None, :]
    eye = jnp.eye(n, dtype=bool)
    pos_mask = same & ~eye
    neg_mask = ~same
    base = 0.5 * (sim.min(axis=1, keepdims=True) + sim.max(axis=1, keepdims=True))
    pos_logit = jnp.sum(jnp.where(pos_mask, jnp.exp(alpha * (base - sim)), 0.0), axis=1)
    neg_vals = jnp.where(neg_mask, sim, -jnp.inf)
    topk = jax.lax.top_k(neg_vals, min(k, n))[0]
    finite = jnp.isfinite(topk)
    neg_arg = jnp.where(finite, alpha * (base - topk), 0.0)
    neg_logit = jnp.sum(jnp.where(finite, jnp.exp(neg_arg), 0.0), axis=1)
    loss = -jnp.log(pos_logit / (pos_logit + neg_logit))
    return jnp.sum(loss) / n


if __name__ == "__main__":
    # Balanced classes (required by the original masked_select/resize trick):
    # 4 classes x 2 instances -> N = 8 samples, D = 32 features.
    N, D = 8, 32
    key = jax.random.PRNGKey(0)
    x = jax.random.normal(key, (N, D), dtype=jnp.float32)
    targets = jnp.array([0, 0, 1, 1, 2, 2, 3, 3], dtype=jnp.int32)

    # tm=64 -> padded N=128 gives a 2-step grid (exercises tiling + padded-row masking).
    out = nca_loss_pallas(x, targets, alpha=16.0, k=32, tm=64)
    out = jax.block_until_ready(out)

    ref = nca_loss_ref(x, targets, alpha=16.0, k=32)
    assert jnp.isfinite(out), "kernel produced non-finite loss"
    assert jnp.allclose(out, ref, rtol=1e-3, atol=1e-4), (out, ref)

    print("KERNEL_OK")
</pallas_src>

<mosaic_0001>
module attributes {stable_mosaic.version = 11 : i64} {
  func.func @_nca_kernel(%arg0: i32, %arg1: memref<64x1xi32, #tpu.memory_space<vmem>>, %arg2: memref<1x128xi32, #tpu.memory_space<vmem>>, %arg3: memref<64x32xbf16, #tpu.memory_space<vmem>>, %arg4: memref<32x128xbf16, #tpu.memory_space<vmem>>, %arg5: memref<64x1xf32, #tpu.memory_space<vmem>>) attributes {dimension_semantics = [#tpu.dimension_semantics<parallel>], iteration_bounds = array<i64: 2>, scalar_prefetch = 0 : i64, scratch_operands = 0 : i64, tpu.core_type = #tpu.core_type<tc>, window_params = [{transform_indices = @transform_0, window_bounds = array<i64: 64, 1>}, {pipeline_mode = #tpu.pipeline_mode<synchronous>, transform_indices = @transform_1, window_bounds = array<i64: 1, 128>}, {transform_indices = @transform_2, window_bounds = array<i64: 64, 32>}, {pipeline_mode = #tpu.pipeline_mode<synchronous>, transform_indices = @transform_3, window_bounds = array<i64: 32, 128>}, {transform_indices = @transform_4, window_bounds = array<i64: 64, 1>}]} {
    %c0 = arith.constant 0 : index
    %c0_0 = arith.constant 0 : index
    %0 = vector.load %arg3[%c0, %c0_0] : memref<64x32xbf16, #tpu.memory_space<vmem>>, vector<64x32xbf16>
    %c0_1 = arith.constant 0 : index
    %c0_2 = arith.constant 0 : index
    %1 = vector.load %arg4[%c0_1, %c0_2] : memref<32x128xbf16, #tpu.memory_space<vmem>>, vector<32x128xbf16>
    %cst = arith.constant dense<0.000000e+00> : vector<64x128xf32>
    %2 = tpu.matmul %0, %1, %cst {dimension_numbers = #tpu.dot_dimension_numbers<[1], [0], [0], [1], [0, 0, 1, 1], [], []>} : vector<64x32xbf16>, vector<32x128xbf16>, vector<64x128xf32> -> vector<64x128xf32>
    %c0_3 = arith.constant 0 : index
    %c0_4 = arith.constant 0 : index
    %3 = vector.load %arg1[%c0_3, %c0_4] : memref<64x1xi32, #tpu.memory_space<vmem>>, vector<64x1xi32>
    %c0_5 = arith.constant 0 : index
    %c0_6 = arith.constant 0 : index
    %4 = vector.load %arg2[%c0_5, %c0_6] : memref<1x128xi32, #tpu.memory_space<vmem>>, vector<1x128xi32>
    %c64_i32 = arith.constant 64 : i32
    %5 = arith.muli %arg0, %c64_i32 : i32
    %6 = tpu.iota {dimensions = array<i32: 0>} : vector<64x1xi32>
    %7 = vector.broadcast %5 : i32 to vector<64x1xi32>
    %8 = arith.addi %7, %6 : vector<64x1xi32>
    %9 = tpu.iota {dimensions = array<i32: 1>} : vector<1x128xi32>
    %10 = vector.broadcast %3 : vector<64x1xi32> to vector<64x128xi32>
    %11 = vector.broadcast %4 : vector<1x128xi32> to vector<64x128xi32>
    %12 = arith.cmpi eq, %10, %11 : vector<64x128xi32>
    %13 = vector.broadcast %8 : vector<64x1xi32> to vector<64x128xi32>
    %14 = vector.broadcast %9 : vector<1x128xi32> to vector<64x128xi32>
    %15 = arith.cmpi eq, %13, %14 : vector<64x128xi32>
    %c8_i32 = arith.constant 8 : i32
    %16 = vector.broadcast %c8_i32 : i32 to vector<1x128xi32>
    %17 = arith.cmpi slt, %9, %16 : vector<1x128xi32>
    %c8_i32_7 = arith.constant 8 : i32
    %18 = vector.broadcast %c8_i32_7 : i32 to vector<64x1xi32>
    %19 = arith.cmpi slt, %8, %18 : vector<64x1xi32>
    %cst_8 = arith.constant dense<true> : vector<64x128xi1>
    %20 = arith.xori %15, %cst_8 : vector<64x128xi1>
    %21 = arith.andi %12, %20 : vector<64x128xi1>
    %22 = vector.broadcast %17 : vector<1x128xi1> to vector<64x128xi1>
    %23 = arith.andi %21, %22 : vector<64x128xi1>
    %cst_9 = arith.constant dense<true> : vector<64x128xi1>
    %24 = arith.xori %12, %cst_9 : vector<64x128xi1>
    %25 = vector.broadcast %17 : vector<1x128xi1> to vector<64x128xi1>
    %26 = arith.andi %24, %25 : vector<64x128xi1>
    %cst_10 = arith.constant -1.000000e+30 : f32
    %27 = vector.shape_cast %17 : vector<1x128xi1> to vector<1x128xi1>
    %28 = vector.broadcast %27 : vector<1x128xi1> to vector<64x128xi1>
    %29 = vector.broadcast %cst_10 : f32 to vector<64x128xf32>
    %30 = arith.select %28, %2, %29 : vector<64x128xi1>, vector<64x128xf32>
    %cst_11 = arith.constant dense<0xFF800000> : vector<64xf32>
    %31 = vector.multi_reduction <maximumf>, %30, %cst_11 [1] : vector<64x128xf32> to vector<64xf32>
    %32 = vector.shape_cast %31 : vector<64xf32> to vector<64x1xf32>
    %cst_12 = arith.constant 1.000000e+30 : f32
    %33 = vector.shape_cast %17 : vector<1x128xi1> to vector<1x128xi1>
    %34 = vector.broadcast %33 : vector<1x128xi1> to vector<64x128xi1>
    %35 = vector.broadcast %cst_12 : f32 to vector<64x128xf32>
    %36 = arith.select %34, %2, %35 : vector<64x128xi1>, vector<64x128xf32>
    %cst_13 = arith.constant dense<0x7F800000> : vector<64xf32>
    %37 = vector.multi_reduction <minimumf>, %36, %cst_13 [1] : vector<64x128xf32> to vector<64xf32>
    %38 = vector.shape_cast %37 : vector<64xf32> to vector<64x1xf32>
    %39 = arith.addf %38, %32 : vector<64x1xf32>
    %cst_14 = arith.constant 5.000000e-01 : f32
    %40 = vector.broadcast %cst_14 : f32 to vector<64x1xf32>
    %41 = arith.mulf %40, %39 : vector<64x1xf32>
    %42 = vector.broadcast %41 : vector<64x1xf32> to vector<64x128xf32>
    %43 = arith.subf %42, %2 : vector<64x128xf32>
    %cst_15 = arith.constant 1.600000e+01 : f32
    %44 = vector.broadcast %cst_15 : f32 to vector<64x128xf32>
    %45 = arith.mulf %44, %43 : vector<64x128xf32>
    %46 = math.exp %45 : vector<64x128xf32>
    %cst_16 = arith.constant 0.000000e+00 : f32
    %47 = vector.broadcast %cst_16 : f32 to vector<64x128xf32>
    %48 = arith.select %23, %46, %47 : vector<64x128xi1>, vector<64x128xf32>
    %cst_17 = arith.constant dense<0.000000e+00> : vector<64xf32>
    %49 = vector.multi_reduction <add>, %48, %cst_17 [1] : vector<64x128xf32> to vector<64xf32>
    %50 = vector.shape_cast %49 : vector<64xf32> to vector<64x1xf32>
    %cst_18 = arith.constant -1.000000e+30 : f32
    %51 = vector.broadcast %cst_18 : f32 to vector<64x128xf32>
    %52 = arith.select %26, %2, %51 : vector<64x128xi1>, vector<64x128xf32>
    %cst_19 = arith.constant 1.000000e+30 : f32
    %53 = vector.broadcast %cst_19 : f32 to vector<64x1xf32>
    %cst_20 = arith.constant 0.000000e+00 : f32
    %54 = vector.broadcast %cst_20 : f32 to vector<64x1xf32>
    %c0_i32 = arith.constant 0 : i32
    %55 = vector.broadcast %53 : vector<64x1xf32> to vector<64x128xf32>
    %56 = arith.cmpf olt, %52, %55 : vector<64x128xf32>
    %cst_21 = arith.constant -1.000000e+30 : f32
    %57 = vector.broadcast %cst_21 : f32 to vector<64x128xf32>
    %58 = arith.select %56, %52, %57 : vector<64x128xi1>, vector<64x128xf32>
    %cst_22 = arith.constant dense<0xFF800000> : vector<64xf32>
    %59 = vector.multi_reduction <maximumf>, %58, %cst_22 [1] : vector<64x128xf32> to vector<64xf32>
    %60 = vector.shape_cast %59 : vector<64xf32> to vector<64x1xf32>
    %cst_23 = arith.constant -5.000000e+29 : f32
    %61 = vector.broadcast %cst_23 : f32 to vector<64x1xf32>
    %62 = arith.cmpf ogt, %60, %61 : vector<64x1xf32>
    %63 = arith.subf %41, %60 : vector<64x1xf32>
    %cst_24 = arith.constant 1.600000e+01 : f32
    %64 = vector.broadcast %cst_24 : f32 to vector<64x1xf32>
    %65 = arith.mulf %64, %63 : vector<64x1xf32>
    %cst_25 = arith.constant 0.000000e+00 : f32
    %66 = vector.broadcast %cst_25 : f32 to vector<64x1xf32>
    %67 = arith.select %62, %65, %66 : vector<64x1xi1>, vector<64x1xf32>
    %68 = math.exp %67 : vector<64x1xf32>
    %cst_26 = arith.constant 0.000000e+00 : f32
    %69 = vector.broadcast %cst_26 : f32 to vector<64x1xf32>
    %70 = arith.select %62, %68, %69 : vector<64x1xi1>, vector<64x1xf32>
    %71 = arith.addf %54, %70 : vector<64x1xf32>
    %c1_i32 = arith.constant 1 : i32
    %72 = vector.broadcast %60 : vector<64x1xf32> to vector<64x128xf32>
    %73 = arith.cmpf olt, %52, %72 : vector<64x128xf32>
    %cst_27 = arith.constant -1.000000e+30 : f32
    %74 = vector.broadcast %cst_27 : f32 to vector<64x128xf32>
    %75 = arith.select %73, %52, %74 : vector<64x128xi1>, vector<64x128xf32>
    %cst_28 = arith.constant dense<0xFF800000> : vector<64xf32>
    %76 = vector.multi_reduction <maximumf>, %75, %cst_28 [1] : vector<64x128xf32> to vector<64xf32>
    %77 = vector.shape_cast %76 : vector<64xf32> to vector<64x1xf32>
    %cst_29 = arith.constant -5.000000e+29 : f32
    %78 = vector.broadcast %cst_29 : f32 to vector<64x1xf32>
    %79 = arith.cmpf ogt, %77, %78 : vector<64x1xf32>
    %80 = arith.subf %41, %77 : vector<64x1xf32>
    %cst_30 = arith.constant 1.600000e+01 : f32
    %81 = vector.broadcast %cst_30 : f32 to vector<64x1xf32>
    %82 = arith.mulf %81, %80 : vector<64x1xf32>
    %cst_31 = arith.constant 0.000000e+00 : f32
    %83 = vector.broadcast %cst_31 : f32 to vector<64x1xf32>
    %84 = arith.select %79, %82, %83 : vector<64x1xi1>, vector<64x1xf32>
    %85 = math.exp %84 : vector<64x1xf32>
    %cst_32 = arith.constant 0.000000e+00 : f32
    %86 = vector.broadcast %cst_32 : f32 to vector<64x1xf32>
    %87 = arith.select %79, %85, %86 : vector<64x1xi1>, vector<64x1xf32>
    %88 = arith.addf %71, %87 : vector<64x1xf32>
    %c2_i32 = arith.constant 2 : i32
    %89 = vector.broadcast %77 : vector<64x1xf32> to vector<64x128xf32>
    %90 = arith.cmpf olt, %52, %89 : vector<64x128xf32>
    %cst_33 = arith.constant -1.000000e+30 : f32
    %91 = vector.broadcast %cst_33 : f32 to vector<64x128xf32>
    %92 = arith.select %90, %52, %91 : vector<64x128xi1>, vector<64x128xf32>
    %cst_34 = arith.constant dense<0xFF800000> : vector<64xf32>
    %93 = vector.multi_reduction <maximumf>, %92, %cst_34 [1] : vector<64x128xf32> to vector<64xf32>
    %94 = vector.shape_cast %93 : vector<64xf32> to vector<64x1xf32>
    %cst_35 = arith.constant -5.000000e+29 : f32
    %95 = vector.broadcast %cst_35 : f32 to vector<64x1xf32>
    %96 = arith.cmpf ogt, %94, %95 : vector<64x1xf32>
    %97 = arith.subf %41, %94 : vector<64x1xf32>
    %cst_36 = arith.constant 1.600000e+01 : f32
    %98 = vector.broadcast %cst_36 : f32 to vector<64x1xf32>
    %99 = arith.mulf %98, %97 : vector<64x1xf32>
    %cst_37 = arith.constant 0.000000e+00 : f32
    %100 = vector.broadcast %cst_37 : f32 to vector<64x1xf32>
    %101 = arith.select %96, %99, %100 : vector<64x1xi1>, vector<64x1xf32>
    %102 = math.exp %101 : vector<64x1xf32>
    %cst_38 = arith.constant 0.000000e+00 : f32
    %103 = vector.broadcast %cst_38 : f32 to vector<64x1xf32>
    %104 = arith.select %96, %102, %103 : vector<64x1xi1>, vector<64x1xf32>
    %105 = arith.addf %88, %104 : vector<64x1xf32>
    %c3_i32 = arith.constant 3 : i32
    %106 = vector.broadcast %94 : vector<64x1xf32> to vector<64x128xf32>
    %107 = arith.cmpf olt, %52, %106 : vector<64x128xf32>
    %cst_39 = arith.constant -1.000000e+30 : f32
    %108 = vector.broadcast %cst_39 : f32 to vector<64x128xf32>
    %109 = arith.select %107, %52, %108 : vector<64x128xi1>, vector<64x128xf32>
    %cst_40 = arith.constant dense<0xFF800000> : vector<64xf32>
    %110 = vector.multi_reduction <maximumf>, %109, %cst_40 [1] : vector<64x128xf32> to vector<64xf32>
    %111 = vector.shape_cast %110 : vector<64xf32> to vector<64x1xf32>
    %cst_41 = arith.constant -5.000000e+29 : f32
    %112 = vector.broadcast %cst_41 : f32 to vector<64x1xf32>
    %113 = arith.cmpf ogt, %111, %112 : vector<64x1xf32>
    %114 = arith.subf %41, %111 : vector<64x1xf32>
    %cst_42 = arith.constant 1.600000e+01 : f32
    %115 = vector.broadcast %cst_42 : f32 to vector<64x1xf32>
    %116 = arith.mulf %115, %114 : vector<64x1xf32>
    %cst_43 = arith.constant 0.000000e+00 : f32
    %117 = vector.broadcast %cst_43 : f32 to vector<64x1xf32>
    %118 = arith.select %113, %116, %117 : vector<64x1xi1>, vector<64x1xf32>
    %119 = math.exp %118 : vector<64x1xf32>
    %cst_44 = arith.constant 0.000000e+00 : f32
    %120 = vector.broadcast %cst_44 : f32 to vector<64x1xf32>
    %121 = arith.select %113, %119, %120 : vector<64x1xi1>, vector<64x1xf32>
    %122 = arith.addf %105, %121 : vector<64x1xf32>
    %c4_i32 = arith.constant 4 : i32
    %123 = vector.broadcast %111 : vector<64x1xf32> to vector<64x128xf32>
    %124 = arith.cmpf olt, %52, %123 : vector<64x128xf32>
    %cst_45 = arith.constant -1.000000e+30 : f32
    %125 = vector.broadcast %cst_45 : f32 to vector<64x128xf32>
    %126 = arith.select %124, %52, %125 : vector<64x128xi1>, vector<64x128xf32>
    %cst_46 = arith.constant dense<0xFF800000> : vector<64xf32>
    %127 = vector.multi_reduction <maximumf>, %126, %cst_46 [1] : vector<64x128xf32> to vector<64xf32>
    %128 = vector.shape_cast %127 : vector<64xf32> to vector<64x1xf32>
    %cst_47 = arith.constant -5.000000e+29 : f32
    %129 = vector.broadcast %cst_47 : f32 to vector<64x1xf32>
    %130 = arith.cmpf ogt, %128, %129 : vector<64x1xf32>
    %131 = arith.subf %41, %128 : vector<64x1xf32>
    %cst_48 = arith.constant 1.600000e+01 : f32
    %132 = vector.broadcast %cst_48 : f32 to vector<64x1xf32>
    %133 = arith.mulf %132, %131 : vector<64x1xf32>
    %cst_49 = arith.constant 0.000000e+00 : f32
    %134 = vector.broadcast %cst_49 : f32 to vector<64x1xf32>
    %135 = arith.select %130, %133, %134 : vector<64x1xi1>, vector<64x1xf32>
    %136 = math.exp %135 : vector<64x1xf32>
    %cst_50 = arith.constant 0.000000e+00 : f32
    %137 = vector.broadcast %cst_50 : f32 to vector<64x1xf32>
    %138 = arith.select %130, %136, %137 : vector<64x1xi1>, vector<64x1xf32>
    %139 = arith.addf %122, %138 : vector<64x1xf32>
    %c5_i32 = arith.constant 5 : i32
    %140 = vector.broadcast %128 : vector<64x1xf32> to vector<64x128xf32>
    %141 = arith.cmpf olt, %52, %140 : vector<64x128xf32>
    %cst_51 = arith.constant -1.000000e+30 : f32
    %142 = vector.broadcast %cst_51 : f32 to vector<64x128xf32>
    %143 = arith.select %141, %52, %142 : vector<64x128xi1>, vector<64x128xf32>
    %cst_52 = arith.constant dense<0xFF800000> : vector<64xf32>
    %144 = vector.multi_reduction <maximumf>, %143, %cst_52 [1] : vector<64x128xf32> to vector<64xf32>
    %145 = vector.shape_cast %144 : vector<64xf32> to vector<64x1xf32>
    %cst_53 = arith.constant -5.000000e+29 : f32
    %146 = vector.broadcast %cst_53 : f32 to vector<64x1xf32>
    %147 = arith.cmpf ogt, %145, %146 : vector<64x1xf32>
    %148 = arith.subf %41, %145 : vector<64x1xf32>
    %cst_54 = arith.constant 1.600000e+01 : f32
    %149 = vector.broadcast %cst_54 : f32 to vector<64x1xf32>
    %150 = arith.mulf %149, %148 : vector<64x1xf32>
    %cst_55 = arith.constant 0.000000e+00 : f32
    %151 = vector.broadcast %cst_55 : f32 to vector<64x1xf32>
    %152 = arith.select %147, %150, %151 : vector<64x1xi1>, vector<64x1xf32>
    %153 = math.exp %152 : vector<64x1xf32>
    %cst_56 = arith.constant 0.000000e+00 : f32
    %154 = vector.broadcast %cst_56 : f32 to vector<64x1xf32>
    %155 = arith.select %147, %153, %154 : vector<64x1xi1>, vector<64x1xf32>
    %156 = arith.addf %139, %155 : vector<64x1xf32>
    %c6_i32 = arith.constant 6 : i32
    %157 = vector.broadcast %145 : vector<64x1xf32> to vector<64x128xf32>
    %158 = arith.cmpf olt, %52, %157 : vector<64x128xf32>
    %cst_57 = arith.constant -1.000000e+30 : f32
    %159 = vector.broadcast %cst_57 : f32 to vector<64x128xf32>
    %160 = arith.select %158, %52, %159 : vector<64x128xi1>, vector<64x128xf32>
    %cst_58 = arith.constant dense<0xFF800000> : vector<64xf32>
    %161 = vector.multi_reduction <maximumf>, %160, %cst_58 [1] : vector<64x128xf32> to vector<64xf32>
    %162 = vector.shape_cast %161 : vector<64xf32> to vector<64x1xf32>
    %cst_59 = arith.constant -5.000000e+29 : f32
    %163 = vector.broadcast %cst_59 : f32 to vector<64x1xf32>
    %164 = arith.cmpf ogt, %162, %163 : vector<64x1xf32>
    %165 = arith.subf %41, %162 : vector<64x1xf32>
    %cst_60 = arith.constant 1.600000e+01 : f32
    %166 = vector.broadcast %cst_60 : f32 to vector<64x1xf32>
    %167 = arith.mulf %166, %165 : vector<64x1xf32>
    %cst_61 = arith.constant 0.000000e+00 : f32
    %168 = vector.broadcast %cst_61 : f32 to vector<64x1xf32>
    %169 = arith.select %164, %167, %168 : vector<64x1xi1>, vector<64x1xf32>
    %170 = math.exp %169 : vector<64x1xf32>
    %cst_62 = arith.constant 0.000000e+00 : f32
    %171 = vector.broadcast %cst_62 : f32 to vector<64x1xf32>
    %172 = arith.select %164, %170, %171 : vector<64x1xi1>, vector<64x1xf32>
    %173 = arith.addf %156, %172 : vector<64x1xf32>
    %c7_i32 = arith.constant 7 : i32
    %174 = vector.broadcast %162 : vector<64x1xf32> to vector<64x128xf32>
    %175 = arith.cmpf olt, %52, %174 : vector<64x128xf32>
    %cst_63 = arith.constant -1.000000e+30 : f32
    %176 = vector.broadcast %cst_63 : f32 to vector<64x128xf32>
    %177 = arith.select %175, %52, %176 : vector<64x128xi1>, vector<64x128xf32>
    %cst_64 = arith.constant dense<0xFF800000> : vector<64xf32>
    %178 = vector.multi_reduction <maximumf>, %177, %cst_64 [1] : vector<64x128xf32> to vector<64xf32>
    %179 = vector.shape_cast %178 : vector<64xf32> to vector<64x1xf32>
    %cst_65 = arith.constant -5.000000e+29 : f32
    %180 = vector.broadcast %cst_65 : f32 to vector<64x1xf32>
    %181 = arith.cmpf ogt, %179, %180 : vector<64x1xf32>
    %182 = arith.subf %41, %179 : vector<64x1xf32>
    %cst_66 = arith.constant 1.600000e+01 : f32
    %183 = vector.broadcast %cst_66 : f32 to vector<64x1xf32>
    %184 = arith.mulf %183, %182 : vector<64x1xf32>
    %cst_67 = arith.constant 0.000000e+00 : f32
    %185 = vector.broadcast %cst_67 : f32 to vector<64x1xf32>
    %186 = arith.select %181, %184, %185 : vector<64x1xi1>, vector<64x1xf32>
    %187 = math.exp %186 : vector<64x1xf32>
    %cst_68 = arith.constant 0.000000e+00 : f32
    %188 = vector.broadcast %cst_68 : f32 to vector<64x1xf32>
    %189 = arith.select %181, %187, %188 : vector<64x1xi1>, vector<64x1xf32>
    %190 = arith.addf %173, %189 : vector<64x1xf32>
    %191 = arith.addf %50, %190 : vector<64x1xf32>
    %192 = arith.divf %50, %191 : vector<64x1xf32>
    %193 = math.log %192 : vector<64x1xf32>
    %cst_69 = arith.constant 0.000000e+00 : f32
    %194 = vector.broadcast %cst_69 : f32 to vector<64x1xf32>
    %195 = arith.subf %194, %193 : vector<64x1xf32>
    %cst_70 = arith.constant 0.000000e+00 : f32
    %196 = vector.broadcast %cst_70 : f32 to vector<64x1xf32>
    %197 = arith.select %19, %195, %196 : vector<64x1xi1>, vector<64x1xf32>
    %c0_71 = arith.constant 0 : index
    %c0_72 = arith.constant 0 : index
    %198 = vector.load %arg5[%c0_71, %c0_72] : memref<64x1xf32, #tpu.memory_space<vmem>>, vector<64x1xf32>
    tpu.vector_store %arg5[%c0_71, %c0_72], %197 {strides = array<i32>} : memref<64x1xf32, #tpu.memory_space<vmem>>, vector<64x1xf32>,
    return
  }
  func.func @transform_0(%arg0: i32) -> (i32, i32) {
    %c0_i32 = arith.constant 0 : i32
    %c0_i32_0 = arith.constant 0 : i32
    return %arg0, %c0_i32 : i32, i32
  }
  func.func @transform_1(%arg0: i32) -> (i32, i32) {
    %c0_i32 = arith.constant 0 : i32
    %c0_i32_0 = arith.constant 0 : i32
    %c0_i32_1 = arith.constant 0 : i32
    return %c0_i32, %c0_i32_0 : i32, i32
  }
  func.func @transform_2(%arg0: i32) -> (i32, i32) {
    %c0_i32 = arith.constant 0 : i32
    %c0_i32_0 = arith.constant 0 : i32
    return %arg0, %c0_i32 : i32, i32
  }
  func.func @transform_3(%arg0: i32) -> (i32, i32) {
    %c0_i32 = arith.constant 0 : i32
    %c0_i32_0 = arith.constant 0 : i32
    %c0_i32_1 = arith.constant 0 : i32
    return %c0_i32, %c0_i32_0 : i32, i32
  }
  func.func @transform_4(%arg0: i32) -> (i32, i32) {
    %c0_i32 = arith.constant 0 : i32
    %c0_i32_0 = arith.constant 0 : i32
    return %arg0, %c0_i32 : i32, i32
  }
}

</mosaic_0001>

<bundles_post_ra>
// kernel: tpu_custom_call.1
= control target key start
LH: loop header
LB: loop body
LE: loop exit
PB: predicated region body
PF: predicated region fallthrough
CT: control target
= control target key end

     0   :  { %s1776_s15 = smov 0   ;;  %s3072_s0 = inlined_call_operand.vmem [shape: s32[128,1], index: 0, kind: input, shape index: {}]   ;;  %s3073_s1 = inlined_call_operand.vmem [shape: s32[1,128], index: 1, kind: input, shape index: {}]   ;;  %s3074_s2 = inlined_call_operand.vmem [shape: bf16[128,32], index: 2, kind: input, shape index: {}]   ;;  %s3075_s3 = inlined_call_operand.vmem [shape: bf16[32,128], index: 3, kind: input, shape index: {}]   ;;  %s3076_s4 = inlined_call_operand.vmem [shape: f32[128,1], index: 4, kind: output, shape index: {}]  }
   0x1 LB: > { %s1500_s16 = sadd.s32 4294967295, %s1747_s15   ;;  %p1504_p0 = scmp.ge.s32.totalorder %s1747_s15, 1  ;;  %s1747_s15 = sphi %s1776_s15, %s14_s15  }
   0x2   : > { %p174_p1 = scmp.lt.s32.totalorder %s1747_s15, 3 }
   0x4   : > { %p175_p2 = pnand %p1504_p0, %p174_p1 }
   0x6   : > { %178 = sbr.rel (%p175_p2) target bundleno = 1475 (0x5c3), region = 36 }
   0xd   : > { %v1559_v0 = vld [vmem:[%s3075_s3] sm:$0xff]   ;;  %s1505_s19 = sshll.u32 %s1500_s16, 3  ;;  %v356_v1 = vlaneseq  ;;  %v1560_v2 = vld [vmem:[%s3075_s3 + $0x8] sm:$0xff]   ;;  %s1521_s22 = sshll.u32 %s1500_s16, 6  ;;  %v1749_v7 = vmov 0   ;;  %vm268_vm0 = vcmask 261120  }
   0xe   : > { %p206_p3 = scmp.lt.s32.totalorder %s1505_s19, 15  ;;  %1531 = vmatprep.subr.bf16.mxu0 %v1559_v0  ;;  %1543 = vmatprep.subr.bf16.mxu1 %v1559_v0  ;;  %v1794_v4 = vstv %s1521_s22  ;;  %v1847_v30 = vld [vmem:[%s3073_s1] ss:$0 sm:$0xff]  ;;  %vm1750_vm7 = vmmov 1   ;;  %v3200_v38 = vmov 0  ;;  %v3203_v42 = vmov 0 }
   0xf   : > { %v1790_v3 = vshrl.u32 %v356_v1, 7  ;;  %1532 = vmatpush3.bf16.msra.mxu0 %v1559_v0  ;;  %1545 = vmatpush3.bf16.msra.mxu1 %v1559_v0  ;;  %v1797_v6 = vand.u32 127, %v356_v1  ;;  %v3206_v45 = vmov 0  ;;  %v3210_v49 = vmov 0 }
  0x10   : > { %s3370_s19 = smov (!%p206_p3, %s1505_s19), 15  ;;  %1533 = vmatprep.subr.bf16.mxu0 %v1560_v2  ;;  %1544 = vmatprep.subr.bf16.mxu1 %v1560_v2  ;;  %v3213_v50 = vmov 0 }
  0x11   : > { %v359_v5 = vadd.s32 16, %v1790_v3  ;;  %3189 = vst [vmem:[#allocation2_spill] sm:$0xff] %v1797_v6  ;;  %s1508_s23 = sshll.u32 %s3370_s19, 2  ;;  %1558 = vset.pattern.permute.xlu1 %v1749_v7  ;;  %1557 = vset.pattern.permute.xlu0 %v1749_v7  ;;  %s1506_s24 = sshll.u32 %s3370_s19, 3  ;;  %v1816_v17 = vadd.s32 %v1794_v4, %v1790_v3  ;;  %v360_v20 = vadd.s32 24, %v1790_v3  ;;  %v358_v23 = vadd.s32 8, %v1790_v3 }
  0x12   : > { %s215_s27 = scalar_lea.vmem %s3074_s2, %s1508_s23  ;;  %s209_s30 = scalar_lea.vmem %s3072_s0, %s1506_s24  ;;  %v362_v26 = vadd.s32 40, %v1790_v3  ;;  %v361_v28 = vadd.s32 32, %v1790_v3  ;;  %v364_v37 = vadd.s32 56, %v1790_v3  ;;  %v363_v40 = vadd.s32 48, %v1790_v3 }
  0x13   : > { %v1805_v8 = vadd.s32 %v1794_v4, %v359_v5  ;;  %1534 = vmatpush3.bf16.msra.mxu0 %v1560_v2  ;;  %1546 = vmatpush3.bf16.msra.mxu1 %v1560_v2  ;;  %v1561_v9 = vld [vmem:[%s215_s27] sm:$0xff]   ;;  %v1562_v10 = vld [vmem:[%s215_s27 + $0x10] sm:$0xff]   ;;  %v1563_v11 = vld [vmem:[%s215_s27 + $0x8] sm:$0xff]   ;;  %3191 = vst [vmem:[#allocation4_spill] sm:$0xff] %v1816_v17  ;;  %vm412_vm2 = vcmp.eq.s32.totalorder %v1816_v17, %v1797_v6  ;;  %s3044_s9 = scalar_lea.vmem %s3076_s4, %s1506_s24 }
  0x14   : > { %1535 = vmatprep.mubr.msk.bf16.mxu0 %vm268_vm0, %v1561_v9  ;;  %1539 = vmatprep.mubr.msk.bf16.mxu1 %vm268_vm0, %v1562_v10  ;;  %v1564_v12 = vld [vmem:[%s215_s27 + $0x18] sm:$0xff]   ;;  %v348_v13 = vld [vmem:[%s209_s30 + $0x10] sm:$0xff]  ;;  %v346_v14 = vld [vmem:[%s209_s30] sm:$0xff]  ;;  %v1822_v21 = vadd.s32 %v1794_v4, %v360_v20  ;;  %v1828_v25 = vadd.s32 %v1794_v4, %v358_v23  ;;  %v1834_v27 = vadd.s32 %v1794_v4, %v362_v26 }
  0x15   : > { %3190 = vst [vmem:[#allocation3_spill] sm:$0xff] %v1805_v8  ;;  %vm414_vm1 = vcmp.eq.s32.totalorder %v1805_v8, %v1797_v6  ;;  %383 = vperm.xlu1 %1558, %v348_v13   ;;  %377 = vperm.xlu0 %1557, %v346_v14   ;;  %v349_v15 = vld [vmem:[%s209_s30 + $0x18] sm:$0xff]  ;;  %v347_v16 = vld [vmem:[%s209_s30 + $0x8] sm:$0xff]  ;;  %v350_v19 = vld [vmem:[%s209_s30 + $0x20] sm:$0xff]  ;;  %v1840_v29 = vadd.s32 %v1794_v4, %v361_v28 }
  0x16   : > { %1536 = vmatmul.mubr.msk.bf16.vlgmr.msra.gmra.mrb[0].mxu0 %vm268_vm0, %v1563_v11  ;;  %1540 = vmatmul.mubr.msk.bf16.vlgmr.msra.gmra.mrb[0].mxu1 %vm268_vm0, %v1564_v12  ;;  %v351_v18 = vld [vmem:[%s209_s30 + $0x28] sm:$0xff]  ;;  %3192 = vst [vmem:[#allocation5_spill] sm:$0xff] %v1822_v21  ;;  %v353_v22 = vld [vmem:[%s209_s30 + $0x38] sm:$0xff]  ;;  %v352_v24 = vld [vmem:[%s209_s30 + $0x30] sm:$0xff]  ;;  %vm415_vm3 = vcmp.eq.s32.totalorder %v1822_v21, %v1797_v6  ;;  %vm413_vm4 = vcmp.eq.s32.totalorder %v1828_v25, %v1797_v6 }
  0x17   : > { %3193 = vst [vmem:[#allocation6_spill] sm:$0xff] %v1828_v25  ;;  %3194 = vst [vmem:[#allocation7_spill] sm:$0xff] %v1834_v27  ;;  %vm417_vm5 = vcmp.eq.s32.totalorder %v1834_v27, %v1797_v6  ;;  %vm416_vm6 = vcmp.eq.s32.totalorder %v1840_v29, %v1797_v6  ;;  %v1890_v41 = vadd.s32 %v1794_v4, %v364_v37 }
  0x18   : > { %3195 = vst [vmem:[#allocation8_spill] sm:$0xff] %v1840_v29  ;;  %vm431_vm8 = vmxor %vm414_vm1, %vm1750_vm7  ;;  %v1904_v44 = vadd.s32 %v1794_v4, %v363_v40 }
  0x19   : > { %386 = vperm.xlu1 %1558, %v349_v15   ;;  %380 = vperm.xlu0 %1557, %v347_v16   ;;  %vm429_vm10 = vmxor %vm412_vm2, %vm1750_vm7  ;;  %3202 = vst [vmem:[#allocation9_spill] sm:$0xff] %v1890_v41 }
  0x1a   : > { %vm432_vm13 = vmxor %vm415_vm3, %vm1750_vm7  ;;  %3205 = vst [vmem:[#allocation10_spill] sm:$0xff] %v1904_v44 }
  0x1b   : > { %vm430_vm0 = vmxor %vm413_vm4, %vm1750_vm7 }
  0x1c   : > { %vm434_vm3 = vmxor %vm417_vm5, %vm1750_vm7  ;;  %vm419_vm5 = vcmp.eq.s32.totalorder %v1890_v41, %v1797_v6 }
  0x1d   : > { %392 = vperm.xlu1 %1558, %v351_v18   ;;  %389 = vperm.xlu0 %1557, %v350_v19  }
  0x21   : > { %398 = vperm.xlu1 %1558, %v353_v22   ;;  %395 = vperm.xlu0 %1557, %v352_v24  }
  0x94   : > { %v384_v31 = vpop.permute.xlu1 %383  ;;  %v378_v32 = vpop.permute.xlu0 %377 }
  0x95   : > { %vm3081_vm9 = vcmp.eq.s32.totalorder %v384_v31, %v1847_v30  ;;  %vm3079_vm12 = vcmp.eq.s32.totalorder %v378_v32, %v1847_v30 }
  0x96   : > { %vm1860_vm11 = vmand %vm3081_vm9, %vm431_vm8 }
  0x97   : > { %vm1871_vm14 = vmand %vm3079_vm12, %vm429_vm10 }
  0x98   : > { %v387_v34 = vpop.permute.xlu1 %386  ;;  %v381_v36 = vpop.permute.xlu0 %380  ;;  %vm433_vm10 = vmxor %vm416_vm6, %vm1750_vm7 }
  0x99   : > { %vm3077_vm15 = vcmp.eq.s32.totalorder %v387_v34, %v1847_v30  ;;  %vm3078_vm2 = vcmp.eq.s32.totalorder %v381_v36, %v1847_v30 }
  0x9a   : > { %vm1883_vm1 = vmand %vm3077_vm15, %vm432_vm13 }
  0x9b   : > { %v3201_v38 = vsel %vm1883_vm1, 4294967295, %v3200_v38  ;;  %vm1898_vm4 = vmand %vm3078_vm2, %vm430_vm0  ;;  %vm418_vm2 = vcmp.eq.s32.totalorder %v1904_v44, %v1797_v6 }
  0x9c   : > { %v393_v39 = vpop.permute.xlu1 %392  ;;  %v3204_v42 = vsel %vm1898_vm4, 4294967295, %v3203_v42  ;;  %v390_v43 = vpop.permute.xlu0 %389  ;;  %vm436_vm15 = vmxor %vm419_vm5, %vm1750_vm7 }
  0x9d   : > { %vm3080_vm8 = vcmp.eq.s32.totalorder %v393_v39, %v1847_v30  ;;  %vm408_vm0 = vcmp.eq.s32.totalorder %v390_v43, %v1847_v30 }
  0x9e   : > { %vm1914_vm13 = vmand %vm3080_vm8, %vm434_vm3 }
  0x9f   : > { %v3207_v45 = vsel %vm1914_vm13, 4294967295, %v3206_v45  ;;  %vm1922_vm12 = vmand %vm408_vm0, %vm433_vm10  ;;  %vm3151_vm10 = vcmp.lt.s32.totalorder %v1797_v6, 8  ;;  %vm3216_vm13 = vcmp.eq.s32.totalorder %v384_v31, %v1847_v30 }
  0xa0   : > { %v399_v46 = vpop.permute.xlu1 %398  ;;  %v396_v48 = vpop.permute.xlu0 %395  ;;  %vm435_vm3 = vmxor %vm418_vm2, %vm1750_vm7 }
  0xa1   : > { %vm3082_vm6 = vcmp.eq.s32.totalorder %v399_v46, %v1847_v30  ;;  %vm410_vm5 = vcmp.eq.s32.totalorder %v396_v48, %v1847_v30  ;;  %vm457_vm1 = vmxor %vm3216_vm13, %vm1750_vm7 }
  0xa2   : > { %vm1930_vm8 = vmand %vm3082_vm6, %vm436_vm15  ;;  %vm3217_vm6 = vcmp.eq.s32.totalorder %v378_v32, %v1847_v30 }
  0xa3   : > { %v3211_v49 = vsel %vm1930_vm8, 4294967295, %v3210_v49  ;;  %vm1935_vm9 = vmand %vm410_vm5, %vm435_vm3  ;;  %vm3218_vm3 = vcmp.eq.s32.totalorder %v381_v36, %v1847_v30 }
  0xa4   : > { %3212 = vst [vmem:[#allocation11_spill] sm:$0xff] %v3211_v49  ;;  %v3214_v50 = vsel %vm1935_vm9, 4294967295, %v3213_v50  ;;  %vm465_vm2 = vmand %vm457_vm1, %vm3151_vm10 }
  0xa5   : > { %3215 = vst [vmem:[#allocation12_spill] sm:$0xff] %v3214_v50  ;;  %vm459_vm15 = vmxor %vm408_vm0, %vm1750_vm7 }
  0xa6   : > { %vm455_vm8 = vmxor %vm3217_vm6, %vm1750_vm7 }
  0xa7   : > { %vm456_vm4 = vmxor %vm3218_vm3, %vm1750_vm7 }
  0xa8   : > { %vm467_vm9 = vmand %vm459_vm15, %vm3151_vm10 }
  0xa9   : > { %vm463_vm13 = vmand %vm455_vm8, %vm3151_vm10  ;;  %vm3221_vm8 = vcmp.eq.s32.totalorder %v387_v34, %v1847_v30 }
  0xaa   : > { %vm461_vm1 = vmxor %vm410_vm5, %vm1750_vm7 }
  0xab   : > { %vm464_vm0 = vmand %vm456_vm4, %vm3151_vm10 }
  0xac   : > { %vm458_vm6 = vmxor %vm3221_vm8, %vm1750_vm7 }
  0xe9   : > { %v1954_v51 = vpop.f32.mrb[0].mxu0  ;;  %v1958_v52 = vpop.f32.mrb[0].mxu1 }
  0xea   : > { %3219 = vst [vmem:[#allocation13_spill] sm:$0xff] %v1958_v52  ;;  %v1960_v53 = vpop.f32.mrb[1].mxu0  ;;  %v1964_v54 = vsel %vm465_vm2, %v1954_v51, -1e+30  ;;  %v1966_v55 = vpop.f32.mrb[1].mxu1  ;;  %vm466_vm2 = vmand %vm458_vm6, %vm3151_vm10 }
  0xeb   : > { %v1968_v56 = vpop.f32.mrb[2].mxu0  ;;  %v1973_v57 = vsel %vm467_vm9, %v1966_v55, -1e+30  ;;  %v1975_v58 = vpop.f32.mrb[2].mxu1  ;;  %v1983_v60 = vsel %vm463_vm13, %v1960_v53, -1e+30  ;;  %vm469_vm9 = vmand %vm461_vm1, %vm3151_vm10  ;;  %vm3223_vm13 = vcmp.eq.s32.totalorder %v393_v39, %v1847_v30 }
  0xec   : > { %3220 = vst [vmem:[#allocation14_spill] sm:$0xff] %v1975_v58  ;;  %v1977_v59 = vpop.f32.mrb[3].mxu0  ;;  %v1988_v62 = vpop.f32.mrb[3].mxu1  ;;  %vm601_vm4 = vcmp.lt.f32.partialorder %v1964_v54, 1e+30  ;;  %vm460_vm1 = vmxor %vm3223_vm13, %vm1750_vm7 }
  0xed   : > { %v1986_v61 = vsel %vm464_vm0, %v1977_v59, -1e+30  ;;  %vm603_vm5 = vcmp.lt.f32.partialorder %v1973_v57, 1e+30  ;;  %v609_v63 = vsel %vm601_vm4, %v1964_v54, -1e+30  ;;  %vm468_vm0 = vmand %vm460_vm1, %vm3151_vm10 }
  0xee   : > { %3222 = vst [vmem:[#allocation15_spill] sm:$0xff] %v1986_v61  ;;  %v611_v0 = vsel %vm603_vm5, %v1973_v57, -1e+30  ;;  %619 = vmax.xlane.f32.xlu0 %v609_v63  ;;  %vm599_vm15 = vcmp.lt.f32.partialorder %v1983_v60, 1e+30 }
  0xef   : > { %623 = vmax.xlane.f32.xlu1 %v611_v0  ;;  %vm600_vm3 = vcmp.lt.f32.partialorder %v1986_v61, 1e+30  ;;  %v2004_v1 = vsel %vm469_vm9, %v1958_v52, -1e+30  ;;  %v2007_v2 = vsel %vm466_vm2, %v1968_v56, -1e+30  ;;  %vm3225_vm9 = vcmp.eq.s32.totalorder %v399_v46, %v1847_v30 }
  0xf0   : > { %3224 = vst [vmem:[#allocation16_spill] sm:$0xff] %v2004_v1  ;;  %v607_v3 = vsel %vm599_vm15, %v1983_v60, -1e+30  ;;  %v608_v4 = vsel %vm600_vm3, %v1986_v61, -1e+30  ;;  %vm462_vm4 = vmxor %vm3225_vm9, %vm1750_vm7 }
  0xf1   : > { %vm602_vm8 = vcmp.lt.f32.partialorder %v2007_v2, 1e+30  ;;  %vm605_vm6 = vcmp.lt.f32.partialorder %v2004_v1, 1e+30  ;;  %v2019_v5 = vsel %vm468_vm0, %v1988_v62, -1e+30  ;;  %vm470_vm5 = vmand %vm462_vm4, %vm3151_vm10 }
  0xf2   : > { %615 = vmax.xlane.f32.xlu0 %v607_v3  ;;  %3226 = vst [vmem:[#allocation17_spill] sm:$0xff] %v2019_v5  ;;  %v610_v7 = vsel %vm602_vm8, %v2007_v2, -1e+30  ;;  %v613_v9 = vsel %vm605_vm6, %v2004_v1, -1e+30 }
  0xf3   : > { %617 = vmax.xlane.f32.xlu1 %v608_v4  ;;  %vm604_vm2 = vcmp.lt.f32.partialorder %v2019_v5, 1e+30  ;;  %v2027_v10 = vsel %vm470_vm5, %v1975_v58, -1e+30 }
  0xf4   : > { %3227 = vst [vmem:[#allocation18_spill] sm:$0xff] %v2027_v10  ;;  %v612_v11 = vsel %vm604_vm2, %v2019_v5, -1e+30  ;;  %vm606_vm7 = vcmp.lt.f32.partialorder %v2027_v10, 1e+30 }
  0xf5   : > { %v614_v12 = vsel %vm606_vm7, %v2027_v10, -1e+30 }
  0xf6   : > { %621 = vmax.xlane.f32.xlu0 %v610_v7 }
  0xf7   : > { %627 = vmax.xlane.f32.xlu1 %v613_v9 }
  0xfa   : > { %625 = vmax.xlane.f32.xlu0 %v612_v11 }
  0xfe   : > { %629 = vmax.xlane.f32.xlu0 %v614_v12 }
 0x17b   : > { %v2032_v13 = vpop.xlane.xlu0 %619 }
 0x17c   : > { %v2034_v14 = vpop.xlane.xlu1 %623  ;;  %vm697_vm15 = vcmp.lt.f32.partialorder %v1964_v54, %v2032_v13 }
 0x17d   : > { %v705_v15 = vsel %vm697_vm15, %v1964_v54, -1e+30  ;;  %vm699_vm13 = vcmp.lt.f32.partialorder %v1973_v57, %v2034_v14 }
 0x17e   : > { %715 = vmax.xlane.f32.xlu1 %v705_v15  ;;  %v707_v23 = vsel %vm699_vm13, %v1973_v57, -1e+30 }
 0x17f   : > { %v2039_v16 = vpop.xlane.xlu0 %615 }
 0x180   : > { %v2041_v18 = vpop.xlane.xlu1 %617  ;;  %vm695_vm3 = vcmp.lt.f32.partialorder %v1983_v60, %v2039_v16 }
 0x181   : > { %3228 = vst [vmem:[#allocation19_spill] sm:$0xff] %v2041_v18  ;;  %v703_v19 = vsel %vm695_vm3, %v1983_v60, -1e+30  ;;  %vm696_vm8 = vcmp.lt.f32.partialorder %v1986_v61, %v2041_v18 }
 0x182   : > { %711 = vmax.xlane.f32.xlu1 %v703_v19  ;;  %v704_v30 = vsel %vm696_vm8, %v1986_v61, -1e+30 }
 0x183   : > { %v2048_v20 = vpop.xlane.xlu0 %621 }
 0x184   : > { %v2050_v22 = vpop.xlane.xlu1 %627  ;;  %vm698_vm1 = vcmp.lt.f32.partialorder %v2007_v2, %v2048_v20 }
 0x185   : > { %3229 = vst [vmem:[#allocation20_spill] sm:$0xff] %v2050_v22  ;;  %v706_v24 = vsel %vm698_vm1, %v2007_v2, -1e+30  ;;  %vm701_vm0 = vcmp.lt.f32.partialorder %v2004_v1, %v2050_v22 }
 0x186   : > { %719 = vmax.xlane.f32.xlu1 %v707_v23  ;;  %717 = vmax.xlane.f32.xlu0 %v706_v24  ;;  %v709_v28 = vsel %vm701_vm0, %v2004_v1, -1e+30 }
 0x187   : > { %v2060_v26 = vpop.xlane.xlu0 %625 }
 0x188   : > { %3230 = vst [vmem:[#allocation21_spill] sm:$0xff] %v2060_v26  ;;  %vm700_vm6 = vcmp.lt.f32.partialorder %v2019_v5, %v2060_v26 }
 0x189   : > { %v708_v32 = vsel %vm700_vm6, %v2019_v5, -1e+30 }
 0x18a   : > { %723 = vmax.xlane.f32.xlu1 %v709_v28  ;;  %713 = vmax.xlane.f32.xlu0 %v704_v30 }
 0x18b   : > { %v2066_v31 = vpop.xlane.xlu0 %629 }
 0x18c   : > { %3231 = vst [vmem:[#allocation22_spill] sm:$0xff] %v2066_v31  ;;  %vm702_vm9 = vcmp.lt.f32.partialorder %v2027_v10, %v2066_v31 }
 0x18d   : > { %v710_v34 = vsel %vm702_vm9, %v2027_v10, -1e+30 }
 0x18e   : > { %721 = vmax.xlane.f32.xlu0 %v708_v32 }
 0x192   : > { %725 = vmax.xlane.f32.xlu0 %v710_v34 }
 0x20b   : > { %v2072_v36 = vpop.xlane.xlu1 %715 }
 0x20c   : > { %vm793_vm4 = vcmp.lt.f32.partialorder %v1964_v54, %v2072_v36 }
 0x20d   : > { %v801_v37 = vsel %vm793_vm4, %v1964_v54, -1e+30 }
 0x20e   : > { %811 = vmax.xlane.f32.xlu1 %v801_v37 }
 0x20f   : > { %v2077_v39 = vpop.xlane.xlu1 %711 }
 0x210   : > { %vm791_vm5 = vcmp.lt.f32.partialorder %v1983_v60, %v2077_v39 }
 0x211   : > { %v799_v40 = vsel %vm791_vm5, %v1983_v60, -1e+30 }
 0x212   : > { %807 = vmax.xlane.f32.xlu1 %v799_v40 }
 0x213   : > { %v2082_v43 = vpop.xlane.xlu1 %719  ;;  %v2084_v46 = vpop.xlane.xlu0 %717 }
 0x214   : > { %vm795_vm2 = vcmp.lt.f32.partialorder %v1973_v57, %v2082_v43  ;;  %vm794_vm7 = vcmp.lt.f32.partialorder %v2007_v2, %v2084_v46 }
 0x215   : > { %v803_v48 = vsel %vm795_vm2, %v1973_v57, -1e+30  ;;  %v802_v63 = vsel %vm794_vm7, %v2007_v2, -1e+30 }
 0x216   : > { %815 = vmax.xlane.f32.xlu1 %v803_v48  ;;  %813 = vmax.xlane.f32.xlu0 %v802_v63 }
 0x217   : > { %v2092_v0 = vpop.xlane.xlu1 %723  ;;  %v2094_v3 = vpop.xlane.xlu0 %713 }
 0x218   : > { %3232 = vst [vmem:[#allocation23_spill] sm:$0xff] %v2092_v0  ;;  %3233 = vst [vmem:[#allocation24_spill] sm:$0xff] %v2094_v3  ;;  %vm797_vm15 = vcmp.lt.f32.partialorder %v2004_v1, %v2092_v0  ;;  %vm792_vm3 = vcmp.lt.f32.partialorder %v1986_v61, %v2094_v3 }
 0x219   : > { %v805_v4 = vsel %vm797_vm15, %v2004_v1, -1e+30  ;;  %v800_v7 = vsel %vm792_vm3, %v1986_v61, -1e+30 }
 0x21a   : > { %819 = vmax.xlane.f32.xlu1 %v805_v4  ;;  %809 = vmax.xlane.f32.xlu0 %v800_v7 }
 0x21b   : > { %v2102_v9 = vpop.xlane.xlu0 %721 }
 0x21c   : > { %3234 = vst [vmem:[#allocation25_spill] sm:$0xff] %v2102_v9  ;;  %vm796_vm13 = vcmp.lt.f32.partialorder %v2019_v5, %v2102_v9 }
 0x21d   : > { %v804_v11 = vsel %vm796_vm13, %v2019_v5, -1e+30 }
 0x21e   : > { %817 = vmax.xlane.f32.xlu0 %v804_v11 }
 0x21f   : > { %v2107_v12 = vpop.xlane.xlu0 %725 }
 0x220   : > { %3235 = vst [vmem:[#allocation26_spill] sm:$0xff] %v2107_v12  ;;  %vm798_vm1 = vcmp.lt.f32.partialorder %v2027_v10, %v2107_v12 }
 0x221   : > { %v806_v15 = vsel %vm798_vm1, %v2027_v10, -1e+30 }
 0x222   : > { %821 = vmax.xlane.f32.xlu0 %v806_v15 }
 0x29b   : > { %v2112_v19 = vpop.xlane.xlu1 %811 }
 0x29c   : > { %vm889_vm0 = vcmp.lt.f32.partialorder %v1964_v54, %v2112_v19 }
 0x29d   : > { %v897_v23 = vsel %vm889_vm0, %v1964_v54, -1e+30 }
 0x29e   : > { %907 = vmax.xlane.f32.xlu1 %v897_v23 }
 0x29f   : > { %v2117_v24 = vpop.xlane.xlu1 %807 }
 0x2a0   : > { %vm887_vm8 = vcmp.lt.f32.partialorder %v1983_v60, %v2117_v24 }
 0x2a1   : > { %v895_v28 = vsel %vm887_vm8, %v1983_v60, -1e+30 }
 0x2a2   : > { %903 = vmax.xlane.f32.xlu1 %v895_v28 }
 0x2a3   : > { %v2122_v30 = vpop.xlane.xlu1 %815  ;;  %v2124_v32 = vpop.xlane.xlu0 %813 }
 0x2a4   : > { %vm891_vm6 = vcmp.lt.f32.partialorder %v1973_v57, %v2122_v30  ;;  %vm890_vm9 = vcmp.lt.f32.partialorder %v2007_v2, %v2124_v32 }
 0x2a5   : > { %v899_v34 = vsel %vm891_vm6, %v1973_v57, -1e+30  ;;  %v898_v37 = vsel %vm890_vm9, %v2007_v2, -1e+30 }
 0x2a6   : > { %911 = vmax.xlane.f32.xlu1 %v899_v34  ;;  %909 = vmax.xlane.f32.xlu0 %v898_v37 }
 0x2a7   : > { %v2132_v40 = vpop.xlane.xlu1 %819  ;;  %v2134_v48 = vpop.xlane.xlu0 %809 }
 0x2a8   : > { %3236 = vst [vmem:[#allocation27_spill] sm:$0xff] %v2132_v40  ;;  %3237 = vst [vmem:[#allocation28_spill] sm:$0xff] %v2134_v48  ;;  %vm893_vm4 = vcmp.lt.f32.partialorder %v2004_v1, %v2132_v40  ;;  %vm888_vm5 = vcmp.lt.f32.partialorder %v1986_v61, %v2134_v48 }
 0x2a9   : > { %v901_v63 = vsel %vm893_vm4, %v2004_v1, -1e+30  ;;  %v896_v4 = vsel %vm888_vm5, %v1986_v61, -1e+30 }
 0x2aa   : > { %915 = vmax.xlane.f32.xlu1 %v901_v63  ;;  %905 = vmax.xlane.f32.xlu0 %v896_v4 }
 0x2ab   : > { %v2142_v7 = vpop.xlane.xlu0 %817 }
 0x2ac   : > { %3238 = vst [vmem:[#allocation29_spill] sm:$0xff] %v2142_v7  ;;  %vm892_vm2 = vcmp.lt.f32.partialorder %v2019_v5, %v2142_v7 }
 0x2ad   : > { %v900_v11 = vsel %vm892_vm2, %v2019_v5, -1e+30 }
 0x2ae   : > { %913 = vmax.xlane.f32.xlu0 %v900_v11 }
 0x2af   : > { %v2147_v15 = vpop.xlane.xlu0 %821 }
 0x2b0   : > { %3239 = vst [vmem:[#allocation30_spill] sm:$0xff] %v2147_v15  ;;  %vm894_vm7 = vcmp.lt.f32.partialorder %v2027_v10, %v2147_v15 }
 0x2b1   : > { %v902_v23 = vsel %vm894_vm7, %v2027_v10, -1e+30 }
 0x2b2   : > { %917 = vmax.xlane.f32.xlu0 %v902_v23 }
 0x32b   : > { %v2152_v28 = vpop.xlane.xlu1 %907 }
 0x32c   : > { %vm985_vm15 = vcmp.lt.f32.partialorder %v1964_v54, %v2152_v28 }
 0x32d   : > { %v993_v34 = vsel %vm985_vm15, %v1964_v54, -1e+30 }
 0x32e   : > { %1003 = vmax.xlane.f32.xlu1 %v993_v34 }
 0x32f   : > { %v2157_v37 = vpop.xlane.xlu1 %903 }
 0x330   : > { %vm983_vm3 = vcmp.lt.f32.partialorder %v1983_v60, %v2157_v37 }
 0x331   : > { %v991_v63 = vsel %vm983_vm3, %v1983_v60, -1e+30 }
 0x332   : > { %999 = vmax.xlane.f32.xlu1 %v991_v63 }
 0x333   : > { %v2162_v4 = vpop.xlane.xlu1 %911  ;;  %v2164_v11 = vpop.xlane.xlu0 %909 }
 0x334   : > { %vm987_vm13 = vcmp.lt.f32.partialorder %v1973_v57, %v2162_v4  ;;  %vm986_vm1 = vcmp.lt.f32.partialorder %v2007_v2, %v2164_v11 }
 0x335   : > { %v995_v23 = vsel %vm987_vm13, %v1973_v57, -1e+30  ;;  %v994_v34 = vsel %vm986_vm1, %v2007_v2, -1e+30 }
 0x336   : > { %1007 = vmax.xlane.f32.xlu1 %v995_v23  ;;  %1005 = vmax.xlane.f32.xlu0 %v994_v34 }
 0x337   : > { %v2172_v41 = vpop.xlane.xlu1 %915  ;;  %v2174_v27 = vpop.xlane.xlu0 %905 }
 0x338   : > { %3240 = vst [vmem:[#allocation31_spill] sm:$0xff] %v2172_v41  ;;  %3241 = vst [vmem:[#allocation32_spill] sm:$0xff] %v2174_v27  ;;  %vm989_vm0 = vcmp.lt.f32.partialorder %v2004_v1, %v2172_v41  ;;  %vm984_vm8 = vcmp.lt.f32.partialorder %v1986_v61, %v2174_v27  ;;  %v475_v41 = vsel %vm3151_vm10, %v1966_v55, -1e+30 }
 0x339   : > { %v997_v63 = vsel %vm989_vm0, %v2004_v1, -1e+30  ;;  %v992_v44 = vsel %vm984_vm8, %v1986_v61, -1e+30 }
 0x33a   : > { %1011 = vmax.xlane.f32.xlu1 %v997_v63  ;;  %1001 = vmax.xlane.f32.xlu0 %v992_v44 }
 0x33b   : > { %v2182_v25 = vpop.xlane.xlu0 %913 }
 0x33c   : > { %3242 = vst [vmem:[#allocation33_spill] sm:$0xff] %v2182_v25  ;;  %vm988_vm6 = vcmp.lt.f32.partialorder %v2019_v5, %v2182_v25 }
 0x33d   : > { %v996_v23 = vsel %vm988_vm6, %v2019_v5, -1e+30 }
 0x33e   : > { %1009 = vmax.xlane.f32.xlu0 %v996_v23 }
 0x33f   : > { %v2187_v34 = vpop.xlane.xlu0 %917 }
 0x340   : > { %3243 = vst [vmem:[#allocation34_spill] sm:$0xff] %v2187_v34  ;;  %vm990_vm9 = vcmp.lt.f32.partialorder %v2027_v10, %v2187_v34 }
 0x341   : > { %v998_v29 = vsel %vm990_vm9, %v2027_v10, -1e+30 }
 0x342   : > { %1013 = vmax.xlane.f32.xlu0 %v998_v29 }
 0x3bb   : > { %v2192_v21 = vpop.xlane.xlu1 %1003 }
 0x3bc   : > { %vm1081_vm4 = vcmp.lt.f32.partialorder %v1964_v54, %v2192_v21 }
 0x3bd   : > { %v1089_v44 = vsel %vm1081_vm4, %v1964_v54, -1e+30 }
 0x3be   : > { %1099 = vmax.xlane.f32.xlu1 %v1089_v44 }
 0x3bf   : > { %v2197_v63 = vpop.xlane.xlu1 %999 }
 0x3c0   : > { %vm1079_vm5 = vcmp.lt.f32.partialorder %v1983_v60, %v2197_v63 }
 0x3c1   : > { %v1087_v23 = vsel %vm1079_vm5, %v1983_v60, -1e+30 }
 0x3c2   : > { %1095 = vmax.xlane.f32.xlu1 %v1087_v23 }
 0x3c3   : > { %v2202_v17 = vpop.xlane.xlu1 %1007  ;;  %v2204_v8 = vpop.xlane.xlu0 %1005 }
 0x3c4   : > { %vm1083_vm2 = vcmp.lt.f32.partialorder %v1973_v57, %v2202_v17  ;;  %vm1082_vm7 = vcmp.lt.f32.partialorder %v2007_v2, %v2204_v8 }
 0x3c5   : > { %v1091_v29 = vsel %vm1083_vm2, %v1973_v57, -1e+30  ;;  %v1090_v44 = vsel %vm1082_vm7, %v2007_v2, -1e+30 }
 0x3c6   : > { %1103 = vmax.xlane.f32.xlu1 %v1091_v29  ;;  %1101 = vmax.xlane.f32.xlu0 %v1090_v44  ;;  %v471_v29 = vsel %vm3151_vm10, %v1960_v53, -1e+30 }
 0x3c7   : > { %v2212_v34 = vpop.xlane.xlu1 %1011  ;;  %v2214_v15 = vpop.xlane.xlu0 %1001 }
 0x3c8   : > { %3244 = vst [vmem:[#allocation35_spill] sm:$0xff] %v2212_v34  ;;  %3245 = vst [vmem:[#allocation36_spill] sm:$0xff] %v2214_v15  ;;  %vm1085_vm15 = vcmp.lt.f32.partialorder %v2004_v1, %v2212_v34  ;;  %vm1080_vm3 = vcmp.lt.f32.partialorder %v1986_v61, %v2214_v15 }
 0x3c9   : > { %v1093_v23 = vsel %vm1085_vm15, %v2004_v1, -1e+30  ;;  %v1088_v12 = vsel %vm1080_vm3, %v1986_v61, -1e+30  ;;  %vm2354_vm15 = vmand %vm1871_vm14, %vm3151_vm10 }
 0x3ca   : > { %1107 = vmax.xlane.f32.xlu1 %v1093_v23  ;;  %1097 = vmax.xlane.f32.xlu0 %v1088_v12  ;;  %v473_v12 = vsel %vm3151_vm10, %v1954_v51, -1e+30  ;;  %vm2369_vm3 = vmand %vm1860_vm11, %vm3151_vm10  ;;  %vm3264_vm11 = vnez %v3204_v42 }
 0x3cb   : > { %v2222_v31 = vpop.xlane.xlu0 %1009  ;;  %vm2384_vm14 = vmand %vm1922_vm12, %vm3151_vm10  ;;  %vm3269_vm12 = vnez %v3201_v38 }
 0x3cc   : > { %3246 = vst [vmem:[#allocation37_spill] sm:$0xff] %v2222_v31  ;;  %vm1084_vm13 = vcmp.lt.f32.partialorder %v2019_v5, %v2222_v31 }
 0x3cd   : > { %v1092_v44 = vsel %vm1084_vm13, %v2019_v5, -1e+30  ;;  %vm2397_vm13 = vmand %vm3264_vm11, %vm3151_vm10  ;;  %vm3172_vm11 = vcmp.gt.f32.partialorder %v2124_v32, -5e+29 }
 0x3ce   : > { %479 = vmax.xlane.f32.xlu1 %v471_v29  ;;  %1105 = vmax.xlane.f32.xlu0 %v1092_v44  ;;  %v472_v29 = vsel %vm3151_vm10, %v1977_v59, -1e+30  ;;  %v477_v44 = vsel %vm3151_vm10, %v1958_v52, -1e+30 }
 0x3cf   : > { %v2230_v34 = vpop.xlane.xlu0 %1013 }
 0x3d0   : > { %3247 = vst [vmem:[#allocation38_spill] sm:$0xff] %v2230_v34  ;;  %vm1086_vm1 = vcmp.lt.f32.partialorder %v2027_v10, %v2230_v34  ;;  %v474_v34 = vsel %vm3151_vm10, %v1968_v56, -1e+30 }
 0x3d1   : > { %v1094_v23 = vsel %vm1086_vm1, %v2027_v10, -1e+30  ;;  %vm2410_vm1 = vmand %vm3269_vm12, %vm3151_vm10  ;;  %vm3154_vm12 = vcmp.gt.f32.partialorder %v2152_v28, -5e+29 }
 0x3d2   : > { %483 = vmax.xlane.f32.xlu1 %v473_v12  ;;  %1109 = vmax.xlane.f32.xlu0 %v1094_v23  ;;  %v495_v12 = vsel %vm3151_vm10, %v1960_v53, 1e+30  ;;  %v476_v23 = vsel %vm3151_vm10, %v1988_v62, -1e+30 }
 0x3d6   : > { %487 = vmax.xlane.f32.xlu1 %v475_v41  ;;  %481 = vmax.xlane.f32.xlu0 %v472_v29  ;;  %v497_v41 = vsel %vm3151_vm10, %v1954_v51, 1e+30  ;;  %v478_v29 = vsel %vm3151_vm10, %v1975_v58, -1e+30 }
 0x3da   : > { %491 = vmax.xlane.f32.xlu1 %v477_v44  ;;  %485 = vmax.xlane.f32.xlu0 %v474_v34  ;;  %v499_v34 = vsel %vm3151_vm10, %v1966_v55, 1e+30  ;;  %v496_v44 = vsel %vm3151_vm10, %v1977_v59, 1e+30 }
 0x3de   : > { %503 = vmin.xlane.f32.xlu1 %v495_v12  ;;  %489 = vmax.xlane.f32.xlu0 %v476_v23  ;;  %v498_v12 = vsel %vm3151_vm10, %v1968_v56, 1e+30  ;;  %v500_v23 = vsel %vm3151_vm10, %v1988_v62, 1e+30 }
 0x3e2   : > { %507 = vmin.xlane.f32.xlu1 %v497_v41  ;;  %493 = vmax.xlane.f32.xlu0 %v478_v29 }
 0x3e6   : > { %511 = vmin.xlane.f32.xlu1 %v499_v34  ;;  %505 = vmin.xlane.f32.xlu0 %v496_v44 }
 0x3ea   : > { %509 = vmin.xlane.f32.xlu0 %v498_v12 }
 0x3ee   : > { %513 = vmin.xlane.f32.xlu0 %v500_v23 }
 0x44b   : > { %v2274_v41 = vpop.xlane.xlu1 %1099 }
 0x44c   : > { %vm1177_vm0 = vcmp.lt.f32.partialorder %v1964_v54, %v2274_v41 }
 0x44d   : > { %v1185_v29 = vsel %vm1177_vm0, %v1964_v54, -1e+30  ;;  %vm3274_vm0 = vnez %v3207_v45 }
 0x44e   : > { %1195 = vmax.xlane.f32.xlu1 %v1185_v29 }
 0x44f   : > { %v2279_v34 = vpop.xlane.xlu1 %1095 }
 0x450   : > { %vm1175_vm9 = vcmp.lt.f32.partialorder %v1983_v60, %v2279_v34 }
 0x451   : > { %v1183_v31 = vsel %vm1175_vm9, %v1983_v60, -1e+30  ;;  %vm3153_vm9 = vcmp.gt.f32.partialorder %v2072_v36, -5e+29 }
 0x453   : > { %v2281_v44 = vpop.xlane.xlu1 %1103  ;;  %v2283_v40 = vpop.xlane.xlu0 %1101 }
 0x454   : > { %vm1178_vm8 = vcmp.lt.f32.partialorder %v2007_v2, %v2283_v40  ;;  %vm1179_vm4 = vcmp.lt.f32.partialorder %v1973_v57, %v2281_v44 }
 0x455   : > { %v1186_v12 = vsel %vm1178_vm8, %v2007_v2, -1e+30  ;;  %vm2423_vm8 = vmand %vm3274_vm0, %vm3151_vm10  ;;  %vm3162_vm0 = vcmp.gt.f32.partialorder %v2192_v21, -5e+29 }
 0x456   : > { %1197 = vmax.xlane.f32.xlu0 %v1186_v12 }
 0x457   : > { %v2288_v23 = vpop.xlane.xlu1 %1107  ;;  %v2290_v0 = vpop.xlane.xlu0 %1097 }
 0x458   : > { %3248 = vst [vmem:[#allocation39_spill] sm:$0xff] %v2288_v23  ;;  %3249 = vst [vmem:[#allocation40_spill] sm:$0xff] %v2290_v0  ;;  %vm1181_vm6 = vcmp.lt.f32.partialorder %v2004_v1, %v2288_v23  ;;  %v1187_v23 = vsel %vm1179_vm4, %v1973_v57, -1e+30  ;;  %vm1176_vm2 = vcmp.lt.f32.partialorder %v1986_v61, %v2290_v0  ;;  %vm3155_vm4 = vcmp.gt.f32.partialorder %v2048_v20, -5e+29 }
 0x459   : > { %v1189_v29 = vsel %vm1181_vm6, %v2004_v1, -1e+30  ;;  %v1184_v25 = vsel %vm1176_vm2, %v1986_v61, -1e+30  ;;  %vm633_vm6 = vcmp.gt.f32.partialorder %v2032_v13, -5e+29 }
 0x45a   : > { %1203 = vmax.xlane.f32.xlu1 %v1189_v29  ;;  %vm3158_vm2 = vcmp.gt.f32.partialorder %v2084_v46, -5e+29 }
 0x45b   : > { %v2297_v22 = vpop.xlane.xlu0 %1105 }
 0x45c   : > { %3250 = vst [vmem:[#allocation41_spill] sm:$0xff] %v2297_v22  ;;  %vm1180_vm7 = vcmp.lt.f32.partialorder %v2019_v5, %v2297_v22 }
 0x45e   : > { %1191 = vmax.xlane.f32.xlu1 %v1183_v31  ;;  %v501_v31 = vsel %vm3151_vm10, %v1958_v52, 1e+30 }
 0x45f   : > { %v2302_v12 = vpop.xlane.xlu0 %1109 }
 0x460   : > { %3251 = vst [vmem:[#allocation42_spill] sm:$0xff] %v2302_v12  ;;  %vm1182_vm5 = vcmp.lt.f32.partialorder %v2027_v10, %v2302_v12  ;;  %v1188_v12 = vsel %vm1180_vm7, %v2019_v5, -1e+30  ;;  %vm3152_vm7 = vcmp.gt.f32.partialorder %v2112_v19, -5e+29 }
 0x461   : > { %v1190_v29 = vsel %vm1182_vm5, %v2027_v10, -1e+30  ;;  %vm3171_vm5 = vcmp.gt.f32.partialorder %v2077_v39, -5e+29 }
 0x462   : > { %1199 = vmax.xlane.f32.xlu1 %v1187_v23  ;;  %1205 = vmax.xlane.f32.xlu0 %v1190_v29  ;;  %v502_v23 = vsel %vm3151_vm10, %v1975_v58, 1e+30  ;;  %v480_v29 = vpop.xlane.xlu1 %479  ;;  %vm3167_vm10 = vcmp.gt.f32.partialorder %v2274_v41, -5e+29 }
 0x463   : > { %v482_v7 = vpop.xlane.xlu0 %481 }
 0x466   : > { %515 = vmin.xlane.f32.xlu1 %v501_v31  ;;  %1193 = vmax.xlane.f32.xlu0 %v1184_v25  ;;  %v484_v9 = vpop.xlane.xlu1 %483 }
 0x467   : > { %v486_v0 = vpop.xlane.xlu0 %485 }
 0x46a   : > { %1201 = vmax.xlane.f32.xlu0 %v1188_v12  ;;  %v488_v26 = vpop.xlane.xlu1 %487 }
 0x46b   : > { %v490_v15 = vpop.xlane.xlu0 %489 }
 0x46e   : > { %517 = vmin.xlane.f32.xlu0 %v502_v23  ;;  %v2320_v27 = vpop.xlane.xlu1 %491 }
 0x46f   : > { %3252 = vst [vmem:[#allocation43_spill] sm:$0xff] %v2320_v27  ;;  %v2322_v25 = vpop.xlane.xlu0 %493 }
 0x470   : > { %3253 = vst [vmem:[#allocation44_spill] sm:$0xff] %v2322_v25 }
 0x472   : > { %v504_v31 = vpop.xlane.xlu1 %503 }
 0x473   : > { %v506_v22 = vpop.xlane.xlu0 %505  ;;  %v519_v48 = vadd.f32 %v504_v31, %v480_v29 }
 0x474   : > { %v520_v10 = vadd.f32 %v506_v22, %v482_v7 }
 0x475   : > { %v2324_v12 = vmul.f32 0.5, %v519_v48 }
 0x476   : > { %v508_v3 = vpop.xlane.xlu1 %507  ;;  %v2332_v1 = vmul.f32 0.5, %v520_v10 }
 0x477   : > { %v510_v18 = vpop.xlane.xlu0 %509  ;;  %v521_v50 = vadd.f32 %v508_v3, %v484_v9  ;;  %v535_v23 = vsub.f32 %v2324_v12, %v1960_v53 }
 0x478   : > { %v522_v52 = vadd.f32 %v510_v18, %v486_v0  ;;  %3255 = vst [vmem:[#allocation46_spill] sm:$0xff] %v2332_v1 }
 0x479   : > { %v2328_v61 = vmul.f32 0.5, %v521_v50  ;;  %v543_v27 = vmul.f32 16.0, %v535_v23  ;;  %v536_v50 = vsub.f32 %v2332_v1, %v1977_v59  ;;  %v1023_v1 = vsub.f32 %v2324_v12, %v2197_v63  ;;  %v3338_v23 = vld [vmem:[#allocation33_spill] sm:$0xff] }
 0x47a   : > { %v512_v49 = vpop.xlane.xlu1 %511  ;;  %v2334_v48 = vmul.f32 0.5, %v522_v52 }
 0x47b   : > { %v523_v58 = vadd.f32 %v512_v49, %v488_v26  ;;  %v514_v5 = vpop.xlane.xlu0 %513  ;;  %3254 = vst [vmem:[#allocation45_spill] sm:$0xff] %v2328_v61  ;;  %v551_v31 = vmul.f32 1.442695, %v543_v27  ;;  %v537_v3 = vsub.f32 %v2328_v61, %v1954_v51  ;;  %v544_v10 = vmul.f32 16.0, %v536_v50 }
 0x47c   : > { %v524_v29 = vadd.f32 %v514_v5, %v490_v15  ;;  %v641_v15 = vsub.f32 %v2328_v61, %v2032_v13  ;;  %v3265_v50 = vmov 0  ;;  %v929_v45 = vsub.f32 %v2328_v61, %v2152_v28 }
 0x47d   : > { %v2330_v25 = vmul.f32 0.5, %v523_v58  ;;  %v545_v53 = vmul.f32 16.0, %v537_v3  ;;  %v538_v58 = vsub.f32 %v2334_v48, %v1968_v56  ;;  %1565 = vpow2.f32 %v551_v31  ;;  %v3342_v3 = vld [vmem:[#allocation23_spill] sm:$0xff] }
 0x47e   : > { %v2338_v9 = vmul.f32 0.5, %v524_v29  ;;  %v553_v22 = vmul.f32 1.442695, %v544_v10  ;;  %v737_v29 = vsub.f32 %v2328_v61, %v2072_v36  ;;  %v3266_v50 = vsel %vm2397_vm13, 4294967295, %v3265_v50 }
 0x47f   : > { %v539_v49 = vsub.f32 %v2330_v25, %v1966_v55  ;;  %v555_v52 = vmul.f32 1.442695, %v545_v53  ;;  %v546_v27 = vmul.f32 16.0, %v538_v58  ;;  %3267 = vst [vmem:[#allocation49_spill] sm:$0xff] %v3266_v50  ;;  %v3270_v58 = vmov 0 }
 0x480   : > { %3256 = vst [vmem:[#allocation47_spill] sm:$0xff] %v2338_v9  ;;  %v540_v51 = vsub.f32 %v2338_v9, %v1988_v62  ;;  %v3271_v58 = vsel %vm2410_vm1, 4294967295, %v3270_v58  ;;  %v745_v10 = vmul.f32 16.0, %v737_v29  ;;  %v1025_v29 = vsub.f32 %v2328_v61, %v2192_v21 }
 0x481   : > { %v547_v5 = vmul.f32 16.0, %v539_v49  ;;  %1567 = vpow2.f32 %v555_v52  ;;  %v557_v26 = vmul.f32 1.442695, %v546_v27  ;;  %3272 = vst [vmem:[#allocation51_spill] sm:$0xff] %v3271_v58  ;;  %v3275_v27 = vmov 0 }
 0x482   : > { %v548_v55 = vmul.f32 16.0, %v540_v51  ;;  %v3276_v27 = vsel %vm2423_vm8, 4294967295, %v3275_v27  ;;  %v937_v42 = vmul.f32 16.0, %v929_v45  ;;  %v1033_v45 = vmul.f32 16.0, %v1025_v29 }
 0x483   : > { %v559_v18 = vmul.f32 1.442695, %v547_v5  ;;  %v649_v5 = vmul.f32 16.0, %v641_v15  ;;  %3277 = vst [vmem:[#allocation53_spill] sm:$0xff] %v3276_v27  ;;  %v831_v29 = vsub.f32 %v2324_v12, %v2117_v24  ;;  %v930_v31 = vsub.f32 %v2334_v48, %v2164_v11 }
 0x484   : > { %v561_v59 = vmul.f32 1.442695, %v548_v55  ;;  %v738_v55 = vsub.f32 %v2334_v48, %v2084_v46  ;;  %v927_v62 = vsub.f32 %v2324_v12, %v2157_v37  ;;  %v1026_v9 = vsub.f32 %v2334_v48, %v2204_v8 }
 0x485   : > { %1569 = vpow2.f32 %v559_v18  ;;  %v833_v18 = vsub.f32 %v2328_v61, %v2112_v19  ;;  %v657_v51 = vsel %vm633_vm6, %v649_v5, 0.0  ;;  %v1121_v5 = vsub.f32 %v2328_v61, %v2274_v41 }
 0x486   : > { %1571 = vpow2.f32 %v553_v22  ;;  %v753_v22 = vsel %vm3153_vm9, %v745_v10, 0.0  ;;  %v746_v47 = vmul.f32 16.0, %v738_v55  ;;  %v834_v55 = vsub.f32 %v2334_v48, %v2124_v32 }
 0x487   : > { %1573 = vpow2.f32 %v557_v26  ;;  %v2348_v0 = vpop.eup %1565  ;;  %v642_v26 = vsub.f32 %v2334_v48, %v2048_v20  ;;  %v841_v15 = vmul.f32 16.0, %v833_v18  ;;  %v763_v38 = vmul.f32 1.442695, %v753_v22 }
 0x488   : > { %1575 = vpow2.f32 %v561_v59  ;;  %v667_v59 = vmul.f32 1.442695, %v657_v51  ;;  %v735_v18 = vsub.f32 %v2324_v12, %v2077_v39  ;;  %v945_v22 = vsel %vm3154_vm12, %v937_v42, 0.0 }
 0x489   : > { %v650_v10 = vmul.f32 16.0, %v642_v26  ;;  %v849_v51 = vsel %vm3152_vm7, %v841_v15, 0.0  ;;  %v1129_v26 = vmul.f32 16.0, %v1121_v5  ;;  %vm3174_vm7 = vcmp.gt.f32.partialorder %v2039_v16, -5e+29 }
 0x48a   : > { %1577 = vpow2.f32 %v667_v59  ;;  %v639_v59 = vsub.f32 %v2324_v12, %v2039_v16  ;;  %vm3173_vm9 = vcmp.gt.f32.partialorder %v2164_v11, -5e+29  ;;  %v754_v42 = vsel %vm3158_vm2, %v746_v47, 0.0 }
 0x48b   : > { %v2361_v7 = vpop.eup %1567  ;;  %1579 = vpow2.f32 %v763_v38  ;;  %v658_v49 = vsel %vm3155_vm4, %v650_v10, 0.0  ;;  %v859_v38 = vmul.f32 1.442695, %v849_v51  ;;  %v743_v15 = vmul.f32 16.0, %v735_v18 }
 0x48c   : > { %vm3178_vm12 = vcmp.gt.f32.partialorder %v2204_v8, -5e+29  ;;  %v955_v5 = vmul.f32 1.442695, %v945_v22  ;;  %v1041_v10 = vsel %vm3162_vm0, %v1033_v45, 0.0  ;;  %v1137_v47 = vsel %vm3167_vm10, %v1129_v26, 0.0 }
 0x48d   : > { %v669_v18 = vmul.f32 1.442695, %v658_v49  ;;  %v842_v51 = vmul.f32 16.0, %v834_v55  ;;  %vm635_vm2 = vcmp.gt.f32.partialorder %v2034_v14, -5e+29  ;;  %v647_v45 = vmul.f32 16.0, %v639_v59 }
 0x48e   : > { %v765_v22 = vmul.f32 1.442695, %v754_v42  ;;  %vm731_vm0 = vcmp.gt.f32.partialorder %v2082_v43, -5e+29  ;;  %vm3175_vm4 = vcmp.gt.f32.partialorder %v2157_v37, -5e+29  ;;  %1581 = vpow2.f32 %v859_v38 }
 0x48f   : > { %v2373_v35 = vpop.eup %1569  ;;  %v1051_v49 = vmul.f32 1.442695, %v1041_v10  ;;  %v751_v26 = vsel %vm3171_vm5, %v743_v15, 0.0  ;;  %v643_v55 = vsub.f32 %v2330_v25, %v2034_v14  ;;  %1583 = vpow2.f32 %v955_v5 }
 0x490   : > { %v2388_v33 = vpop.eup %1571  ;;  %v1147_v59 = vmul.f32 1.442695, %v1137_v47  ;;  %v938_v42 = vmul.f32 16.0, %v930_v31  ;;  %v739_v27 = vsub.f32 %v2330_v25, %v2082_v43  ;;  %1585 = vpow2.f32 %v669_v18 }
 0x491   : > { %3263 = vst [vmem:[#allocation48_spill] sm:$0xff] %v2388_v33  ;;  %v2401_v53 = vpop.eup %1573  ;;  %v850_v6 = vsel %vm3172_vm11, %v842_v51, 0.0  ;;  %v1122_v38 = vsub.f32 %v2334_v48, %v2283_v40  ;;  %vm3177_vm10 = vcmp.gt.f32.partialorder %v2283_v40, -5e+29  ;;  %1587 = vpow2.f32 %v765_v22 }
 0x492   : > { %3268 = vst [vmem:[#allocation50_spill] sm:$0xff] %v2401_v53  ;;  %v2417_v52 = vpop.eup %1575  ;;  %v1034_v53 = vmul.f32 16.0, %v1026_v9  ;;  %v839_v15 = vmul.f32 16.0, %v831_v29  ;;  %v935_v58 = vmul.f32 16.0, %v927_v62  ;;  %1589 = vpow2.f32 %v1051_v49 }
 0x493   : > { %3273 = vst [vmem:[#allocation52_spill] sm:$0xff] %v2417_v52  ;;  %v1119_v52 = vsub.f32 %v2324_v12, %v2279_v34  ;;  %v759_v31 = vmul.f32 1.442695, %v751_v26  ;;  %v2504_v47 = vmul.f32 16.0, %v1023_v1  ;;  %v651_v33 = vmul.f32 16.0, %v643_v55 }
 0x494   : > { %v1578_v10 = vpop.eup %1577  ;;  %v861_v18 = vmul.f32 1.442695, %v850_v6  ;;  %v946_v51 = vsel %vm3173_vm9, %v938_v42, 0.0  ;;  %v655_v9 = vsel %vm3174_vm7, %v647_v45, 0.0  ;;  %v747_v50 = vmul.f32 16.0, %v739_v27 }
 0x495   : > { %v1580_v5 = vpop.eup %1579  ;;  %1591 = vpow2.f32 %v1147_v59  ;;  %v1042_v62 = vsel %vm3178_vm12, %v1034_v53, 0.0  ;;  %v1130_v29 = vmul.f32 16.0, %v1122_v38  ;;  %v1127_v22 = vmul.f32 16.0, %v1119_v52 }
 0x496   : > { %v681_v1 = vsel %vm633_vm6, %v1578_v10, 0.0  ;;  %vm3278_vm11 = vcmp.gt.f32.partialorder %v2072_v36, -5e+29  ;;  %vm3279_vm9 = vcmp.gt.f32.partialorder %v2117_v24, -5e+29  ;;  %v835_v27 = vsub.f32 %v2330_v25, %v2122_v30 }
 0x497   : > { %v777_v6 = vsel %vm3278_vm11, %v1580_v5, 0.0  ;;  %v847_v49 = vsel %vm3279_vm9, %v839_v15, 0.0  ;;  %vm1015_vm7 = vcmp.gt.f32.partialorder %v2197_v63, -5e+29  ;;  %vm3179_vm5 = vcmp.gt.f32.partialorder %v2279_v34, -5e+29 }
 0x498   : > { %v957_v45 = vmul.f32 1.442695, %v946_v51  ;;  %1593 = vpow2.f32 %v759_v31  ;;  %v663_v53 = vmul.f32 1.442695, %v655_v9  ;;  %v659_v13 = vsel %vm635_vm2, %v651_v33, 0.0  ;;  %v1582_v55 = vpop.eup %1581 }
 0x499   : > { %vm3180_vm6 = vcmp.gt.f32.partialorder %v2162_v4, -5e+29  ;;  %1595 = vpow2.f32 %v861_v18  ;;  %v1053_v36 = vmul.f32 1.442695, %v1042_v62  ;;  %v943_v52 = vsel %vm3175_vm4, %v935_v58, 0.0  ;;  %v1584_v15 = vpop.eup %1583 }
 0x49a   : > { %v755_v26 = vsel %vm731_vm0, %v747_v50, 0.0  ;;  %v785_v59 = vadd.f32 %v777_v6, %v681_v1  ;;  %v1138_v38 = vsel %vm3177_vm10, %v1130_v29, 0.0  ;;  %v855_v10 = vmul.f32 1.442695, %v847_v49  ;;  %v1586_v31 = vpop.eup %1585 }
 0x49b   : > { %v931_v33 = vsub.f32 %v2330_v25, %v2162_v4  ;;  %v671_v58 = vmul.f32 1.442695, %v659_v13  ;;  %v843_v50 = vmul.f32 16.0, %v835_v27  ;;  %v951_v51 = vmul.f32 1.442695, %v943_v52  ;;  %v1588_v62 = vpop.eup %1587 }
 0x49c   : > { %1597 = vpow2.f32 %v663_v53  ;;  %v767_v9 = vmul.f32 1.442695, %v755_v26  ;;  %vm3280_vm11 = vcmp.gt.f32.partialorder %v2112_v19, -5e+29  ;;  %v1149_v6 = vmul.f32 1.442695, %v1138_v38  ;;  %v1590_v49 = vpop.eup %1589 }
 0x49d   : > { %v873_v29 = vsel %vm3280_vm11, %v1582_v55, 0.0  ;;  %1599 = vpow2.f32 %v957_v45  ;;  %vm3181_vm4 = vcmp.gt.f32.partialorder %v2202_v17, -5e+29  ;;  %v939_v27 = vmul.f32 16.0, %v931_v33 }
 0x49e   : > { %1601 = vpow2.f32 %v1053_v36  ;;  %v1027_v53 = vsub.f32 %v2330_v25, %v2202_v17  ;;  %vm3282_vm11 = vcmp.gt.f32.partialorder %v2048_v20, -5e+29  ;;  %vm3283_vm12 = vcmp.gt.f32.partialorder %v2084_v46, -5e+29 }
 0x49f   : > { %1603 = vpow2.f32 %v671_v58  ;;  %v1592_v45 = vpop.eup %1591  ;;  %v682_v52 = vsel %vm3282_vm11, %v1586_v31, 0.0  ;;  %v778_v26 = vsel %vm3283_vm12, %v1588_v62, 0.0  ;;  %v1039_v36 = vsel %vm1015_vm7, %v2504_v47, 0.0 }
 0x4a0   : > { %1605 = vpow2.f32 %v767_v9  ;;  %v1135_v55 = vsel %vm3179_vm5, %v1127_v22, 0.0  ;;  %v786_v58 = vadd.f32 %v778_v26, %v682_v52  ;;  %v1035_v22 = vmul.f32 16.0, %v1027_v53 }
 0x4a1   : > { %1607 = vpow2.f32 %v855_v10  ;;  %v947_v10 = vsel %vm3180_vm6, %v939_v27, 0.0  ;;  %vm3285_vm11 = vcmp.gt.f32.partialorder %v2124_v32, -5e+29  ;;  %v1143_v27 = vmul.f32 1.442695, %v1135_v55 }
 0x4a2   : > { %v1594_v38 = vpop.eup %1593  ;;  %vm3286_vm5 = vcmp.gt.f32.partialorder %v2192_v21, -5e+29  ;;  %vm3288_vm6 = vcmp.gt.f32.partialorder %v2039_v16, -5e+29 }
 0x4db   : > { %v2530_v42 = vpop.xlane.xlu1 %1195 }
 0x4dc   : > { %v1217_v5 = vsub.f32 %v2328_v61, %v2530_v42  ;;  %vm1273_vm9 = vcmp.lt.f32.partialorder %v1964_v54, %v2530_v42  ;;  %v881_v61 = vadd.f32 %v873_v29, %v785_v59  ;;  %vm1209_vm10 = vcmp.gt.f32.partialorder %v2530_v42, -5e+29 }
 0x4dd   : > { %v1281_v18 = vsel %vm1273_vm9, %v1964_v54, -1e+30  ;;  %vm3281_vm9 = vcmp.gt.f32.partialorder %v2122_v30, -5e+29  ;;  %v1123_v59 = vsub.f32 %v2330_v25, %v2281_v44 }
 0x4de   : > { %v1225_v1 = vmul.f32 16.0, %v1217_v5  ;;  %1291 = vmax.xlane.f32.xlu1 %v1281_v18  ;;  %v851_v19 = vsel %vm3281_vm9, %v843_v50, 0.0  ;;  %vm3284_vm9 = vcmp.gt.f32.partialorder %v2152_v28, -5e+29  ;;  %v1596_v5 = vpop.eup %1595  ;;  %v959_v18 = vmul.f32 1.442695, %v947_v10 }
 0x4df   : > { %v969_v20 = vsel %vm3284_vm9, %v1584_v15, 0.0  ;;  %v863_v46 = vmul.f32 1.442695, %v851_v19  ;;  %v1047_v15 = vmul.f32 1.442695, %v1039_v36  ;;  %v1131_v9 = vmul.f32 16.0, %v1123_v59  ;;  %v1598_v62 = vpop.eup %1597 }
 0x4e0   : > { %v1233_v54 = vsel %vm1209_vm10, %v1225_v1, 0.0  ;;  %v977_v50 = vadd.f32 %v969_v20, %v881_v61  ;;  %v874_v29 = vsel %vm3285_vm11, %v1596_v5, 0.0  ;;  %v1600_v61 = vpop.eup %1599  ;;  %vm3287_vm11 = vcmp.gt.f32.partialorder %v2077_v39, -5e+29 }
 0x4e1   : > { %v1243_v13 = vmul.f32 1.442695, %v1233_v54  ;;  %v1043_v54 = vsel %vm3181_vm4, %v1035_v22, 0.0  ;;  %v1602_v19 = vpop.eup %1601  ;;  %v775_v52 = vsel %vm3287_vm11, %v1594_v38, 0.0  ;;  %v679_v21 = vsel %vm3288_vm6, %v1598_v62, 0.0 }
 0x4e2   : > { %vm3290_vm4 = vcmp.gt.f32.partialorder %v2164_v11, -5e+29  ;;  %v1055_v20 = vmul.f32 1.442695, %v1043_v54 }
 0x4e3   : > { %1609 = vpow2.f32 %v1243_v13  ;;  %v2564_v33 = vpop.xlane.xlu0 %1197  ;;  %v1604_v13 = vpop.eup %1603  ;;  %v970_v55 = vsel %vm3290_vm4, %v1600_v61, 0.0  ;;  %vm3291_vm4 = vcmp.gt.f32.partialorder %v2204_v8, -5e+29 }
 0x4e4   : > { %v1218_v47 = vsub.f32 %v2334_v48, %v2564_v33  ;;  %vm1274_vm12 = vcmp.lt.f32.partialorder %v2007_v2, %v2564_v33  ;;  %1611 = vpow2.f32 %v1149_v6  ;;  %vm1210_vm9 = vcmp.gt.f32.partialorder %v2564_v33, -5e+29  ;;  %v1606_v26 = vpop.eup %1605 }
 0x4e5   : > { %v1282_v28 = vsel %vm1274_vm12, %v2007_v2, -1e+30  ;;  %1613 = vpow2.f32 %v951_v51  ;;  %v1065_v2 = vsel %vm3286_vm5, %v1590_v49, 0.0  ;;  %v882_v6 = vadd.f32 %v874_v29, %v786_v58  ;;  %v1608_v39 = vpop.eup %1607 }
 0x4e6   : > { %v1226_v31 = vmul.f32 16.0, %v1218_v47  ;;  %1293 = vmax.xlane.f32.xlu0 %v1282_v28  ;;  %1615 = vpow2.f32 %v863_v46  ;;  %vm1115_vm12 = vcmp.gt.f32.partialorder %v2281_v44, -5e+29  ;;  %v1073_v32 = vadd.f32 %v1065_v2, %v977_v50  ;;  %v3312_v44 = vld [vmem:[#allocation48_spill] sm:$0xff] }
 0x4e7   : > { %v2576_v1 = vpop.xlane.xlu1 %1203  ;;  %1617 = vpow2.f32 %v1047_v15  ;;  %v1139_v49 = vsel %vm1115_vm12, %v1131_v9, 0.0  ;;  %vm3289_vm5 = vcmp.gt.f32.partialorder %v2274_v41, -5e+29  ;;  %v978_v38 = vadd.f32 %v970_v55, %v882_v6  ;;  %v3298_v55 = vld [vmem:[#allocation15_spill] sm:$0xff] }
 0x4e8   : > { %v1234_v51 = vsel %vm1210_vm9, %v1226_v31, 0.0  ;;  %1619 = vpow2.f32 %v959_v18  ;;  %v1161_v36 = vsel %vm3289_vm5, %v1592_v45, 0.0  ;;  %v783_v41 = vadd.f32 %v775_v52, %v679_v21 }
 0x4e9   : > { %v1245_v53 = vmul.f32 1.442695, %v1234_v51  ;;  %v1169_v10 = vadd.f32 %v1161_v36, %v1073_v32  ;;  %v1151_v11 = vmul.f32 1.442695, %v1139_v49  ;;  %v683_v47 = vsel %vm635_vm2, %v1604_v13, 0.0  ;;  %v3295_v32 = vld [vmem:[#allocation16_spill] sm:$0xff] }
 0x4ea   : > { %v779_v22 = vsel %vm731_vm0, %v1606_v26, 0.0  ;;  %v1066_v15 = vsel %vm3291_vm4, %v1602_v19, 0.0  ;;  %vm3293_vm0 = vcmp.gt.f32.partialorder %v2283_v40, -5e+29  ;;  %vm3294_vm5 = vcmp.gt.f32.partialorder %v2157_v37, -5e+29 }
 0x4eb   : > { %1621 = vpow2.f32 %v1245_v53  ;;  %v2595_v59 = vpop.xlane.xlu1 %1191  ;;  %v1074_v18 = vadd.f32 %v1066_v15, %v978_v38  ;;  %vm1277_vm4 = vcmp.lt.f32.partialorder %v3295_v32, %v2576_v1  ;;  %v3297_v37 = vld [vmem:[#allocation43_spill] sm:$0xff]  ;;  %v3303_v15 = vsel %vm2354_vm15, %v2348_v0, 0.0 }
 0x4ec   : > { %1623 = vpow2.f32 %v1143_v27  ;;  %v1215_v16 = vsub.f32 %v2324_v12, %v2595_v59  ;;  %vm1271_vm6 = vcmp.lt.f32.partialorder %v1983_v60, %v2595_v59  ;;  %vm1207_vm11 = vcmp.gt.f32.partialorder %v2595_v59, -5e+29 }
 0x4ed   : > { %v1610_v46 = vpop.eup %1609  ;;  %v1279_v45 = vsel %vm1271_vm6, %v1983_v60, -1e+30  ;;  %1625 = vpow2.f32 %v1055_v20  ;;  %v787_v27 = vadd.f32 %v779_v22, %v683_v47  ;;  %v3302_v22 = vld [vmem:[#allocation13_spill] sm:$0xff] }
 0x4ee   : > { %v1257_v5 = vsel %vm1209_vm10, %v1610_v46, 0.0  ;;  %v1223_v58 = vmul.f32 16.0, %v1215_v16  ;;  %1287 = vmax.xlane.f32.xlu1 %v1279_v45  ;;  %v1612_v50 = vpop.eup %1611  ;;  %vm3292_vm10 = vcmp.gt.f32.partialorder %v2117_v24, -5e+29  ;;  %1627 = vpow2.f32 %v1151_v11  ;;  %v3301_v45 = vld [vmem:[#allocation17_spill] sm:$0xff] }
 0x4ef   : > { %v2608_v28 = vadd.f32 %v1257_v5, %v1169_v10  ;;  %v2613_v60 = vpop.xlane.xlu1 %1199  ;;  %v2615_v42 = vpop.xlane.xlu0 %1205  ;;  %v871_v14 = vsel %vm3292_vm10, %v1608_v39, 0.0  ;;  %v1162_v61 = vsel %vm3293_vm0, %v1612_v50, 0.0  ;;  %vm3296_vm10 = vcmp.gt.f32.partialorder %v2122_v30, -5e+29 }
 0x4f0   : > { %v1614_v31 = vpop.eup %1613  ;;  %v1231_v43 = vsel %vm1207_vm11, %v1223_v58, 0.0  ;;  %v1219_v9 = vsub.f32 %v2330_v25, %v2613_v60  ;;  %v879_v62 = vadd.f32 %v871_v14, %v783_v41  ;;  %vm1275_vm2 = vcmp.lt.f32.partialorder %v1973_v57, %v2613_v60 }
 0x4f1   : > { %v1616_v8 = vpop.eup %1615  ;;  %v1239_v29 = vmul.f32 1.442695, %v1231_v43  ;;  %v1283_v24 = vsel %vm1275_vm2, %v1973_v57, -1e+30  ;;  %v967_v51 = vsel %vm3294_vm5, %v1614_v31, 0.0  ;;  %v1170_v53 = vadd.f32 %v1162_v61, %v1074_v18 }
 0x4f2   : > { %v1227_v2 = vmul.f32 16.0, %v1219_v9  ;;  %v1618_v6 = vpop.eup %1617  ;;  %vm1211_vm6 = vcmp.gt.f32.partialorder %v2613_v60, -5e+29  ;;  %1295 = vmax.xlane.f32.xlu1 %v1283_v24  ;;  %v875_v13 = vsel %vm3296_vm10, %v1616_v8, 0.0  ;;  %v975_v49 = vadd.f32 %v967_v51, %v879_v62  ;;  %v3307_v9 = vld [vmem:[#allocation44_spill] sm:$0xff] }
 0x4f3   : > { %1629 = vpow2.f32 %v1239_v29  ;;  %v516_v54 = vpop.xlane.xlu1 %515  ;;  %v2631_v19 = vpop.xlane.xlu0 %1193  ;;  %v883_v26 = vadd.f32 %v875_v13, %v787_v27  ;;  %v1285_v30 = vsel %vm1277_vm4, %v3295_v32, -1e+30  ;;  %v1063_v41 = vsel %vm1015_vm7, %v1618_v6, 0.0  ;;  %v3309_v6 = vld [vmem:[#allocation14_spill] sm:$0xff] }
 0x4f4   : > { %v1620_v40 = vpop.eup %1619  ;;  %v1235_v57 = vsel %vm1211_vm6, %v1227_v2, 0.0  ;;  %v525_v52 = vadd.f32 %v516_v54, %v3297_v37  ;;  %vm1272_vm2 = vcmp.lt.f32.partialorder %v3298_v55, %v2631_v19  ;;  %vm3300_vm0 = vcmp.gt.f32.partialorder %v2162_v4, -5e+29  ;;  %v3304_v4 = vld [vmem:[#allocation18_spill] sm:$0xff]  ;;  %v3339_v37 = vld [vmem:[#allocation37_spill] sm:$0xff] }
 0x4f5   : > { %v1622_v21 = vpop.eup %1621  ;;  %v1247_v36 = vmul.f32 1.442695, %v1235_v57  ;;  %v1280_v16 = vsel %vm1272_vm2, %v3298_v55, -1e+30  ;;  %v971_v33 = vsel %vm3300_vm0, %v1620_v40, 0.0  ;;  %v1071_v5 = vadd.f32 %v1063_v41, %v975_v49  ;;  %v3317_v49 = vld [vmem:[#allocation2_spill] sm:$0xff] }
 0x4f6   : > { %v1624_v20 = vpop.eup %1623  ;;  %v1258_v39 = vsel %vm1210_vm9, %v1622_v21, 0.0  ;;  %v2644_v38 = vmul.f32 0.5, %v525_v52  ;;  %1299 = vmax.xlane.f32.xlu1 %v1285_v30  ;;  %1289 = vmax.xlane.f32.xlu0 %v1280_v16  ;;  %v979_v58 = vadd.f32 %v971_v33, %v883_v26  ;;  %vm1278_vm7 = vcmp.lt.f32.partialorder %v3304_v4, %v2615_v42  ;;  %v3315_v52 = vld [vmem:[#allocation50_spill] sm:$0xff]  ;;  %v3319_v26 = vld [vmem:[#allocation12_spill] sm:$0xff]  ;;  %v3327_v16 = vld [vmem:[#allocation19_spill] sm:$0xff] }
 0x4f7   : > { %v2648_v46 = vadd.f32 %v1258_v39, %v1170_v53  ;;  %1631 = vpow2.f32 %v1247_v36  ;;  %v2650_v10 = vpop.xlane.xlu0 %1201  ;;  %v1626_v11 = vpop.eup %1625  ;;  %vm3305_vm5 = vcmp.gt.f32.partialorder %v2279_v34, -5e+29  ;;  %vm3306_vm4 = vcmp.gt.f32.partialorder %v2202_v17, -5e+29  ;;  %v3322_v36 = vld [vmem:[#allocation52_spill] sm:$0xff]  ;;  %v3325_v39 = vld [vmem:[#allocation11_spill] sm:$0xff] }
 0x4f8   : > { %3299 = vst [vmem:[#allocation16_spill] sm:$0xff] %v2650_v10  ;;  %vm1276_vm9 = vcmp.lt.f32.partialorder %v3301_v45, %v2650_v10  ;;  %v541_v50 = vsub.f32 %v2644_v38, %v3302_v22  ;;  %v1628_v18 = vpop.eup %1627  ;;  %v1159_v14 = vsel %vm3305_vm5, %v1624_v20, 0.0  ;;  %v1067_v43 = vsel %vm3306_vm4, %v1626_v11, 0.0  ;;  %v3328_v41 = vld [vmem:[#allocation46_spill] sm:$0xff] }
 0x4f9   : > { %v1284_v47 = vsel %vm1276_vm9, %v3301_v45, -1e+30  ;;  %v1167_v56 = vadd.f32 %v1159_v14, %v1071_v5  ;;  %v1075_v29 = vadd.f32 %v1067_v43, %v979_v58  ;;  %v1286_v2 = vsel %vm1278_vm7, %v3304_v4, -1e+30  ;;  %v3329_v45 = vld [vmem:[#allocation24_spill] sm:$0xff] }
 0x4fa   : > { %575 = vadd.xlane.f32.xlu1 %v3303_v15  ;;  %1297 = vmax.xlane.f32.xlu0 %v1284_v47  ;;  %v549_v31 = vmul.f32 16.0, %v541_v50  ;;  %v3308_v17 = vsel %vm2369_vm3, %v2361_v7, 0.0  ;;  %v1163_v34 = vsel %vm1115_vm12, %v1628_v18, 0.0  ;;  %v3310_v7 = vsel %vm2384_vm14, %v2373_v35, 0.0  ;;  %v3330_v47 = vld [vmem:[#allocation28_spill] sm:$0xff] }
 0x4fb   : > { %v518_v63 = vpop.xlane.xlu0 %517  ;;  %v1171_v54 = vadd.f32 %v1163_v34, %v1075_v29  ;;  %v3313_v13 = vsel %vm2397_vm13, %v3312_v44, 0.0  ;;  %v3316_v60 = vsel %vm2410_vm1, %v3315_v52, 0.0  ;;  %vm3318_vm15 = vcmp.lt.s32.totalorder %v3317_v49, 8  ;;  %v3331_v15 = vld [vmem:[#allocation32_spill] sm:$0xff] }
 0x4fc   : > { %v526_v8 = vadd.f32 %v518_v63, %v3307_v9  ;;  %v563_v0 = vmul.f32 1.442695, %v549_v31  ;;  %vm3320_vm3 = vnez %v3319_v26  ;;  %v3323_v55 = vsel %vm2423_vm8, %v3322_v36, 0.0  ;;  %vm3324_vm14 = vmmov %vm3318_vm15  ;;  %v3332_v9 = vld [vmem:[#allocation36_spill] sm:$0xff]  ;;  %v3341_v26 = vld [vmem:[#allocation41_spill] sm:$0xff] }
 0x4fd   : > { %v1630_v62 = vpop.eup %1629  ;;  %vm453_vm12 = vmand %vm3320_vm3, %vm3318_vm15  ;;  %vm3326_vm13 = vnez %v3325_v39  ;;  %v640_v33 = vsub.f32 %v3328_v41, %v3327_v16  ;;  %v736_v11 = vsub.f32 %v3328_v41, %v3329_v45  ;;  %v832_v22 = vsub.f32 %v3328_v41, %v3330_v47 }
 0x4fe   : > { %v1255_v27 = vsel %vm1207_vm11, %v1630_v62, 0.0  ;;  %v2674_v61 = vmul.f32 0.5, %v526_v8  ;;  %579 = vadd.xlane.f32.xlu1 %v3308_v17  ;;  %1301 = vmax.xlane.f32.xlu0 %v1286_v2  ;;  %1633 = vpow2.f32 %v563_v0  ;;  %vm454_vm1 = vmand %vm3326_vm13, %vm3324_vm14  ;;  %vm632_vm8 = vcmp.gt.f32.partialorder %v3327_v16, -5e+29  ;;  %v3333_v62 = vld [vmem:[#allocation21_spill] sm:$0xff]  ;;  %v3335_v17 = vld [vmem:[#allocation40_spill] sm:$0xff] }
 0x4ff   : > { %v2677_v24 = vadd.f32 %v1255_v27, %v1167_v56  ;;  %v648_v5 = vmul.f32 16.0, %v640_v33  ;;  %v744_v58 = vmul.f32 16.0, %v736_v11  ;;  %vm728_vm11 = vcmp.gt.f32.partialorder %v3329_v45, -5e+29  ;;  %v3334_v56 = vld [vmem:[#allocation47_spill] sm:$0xff] }
 0x500   : > { %v542_v59 = vsub.f32 %v2674_v61, %v3309_v6  ;;  %v928_v63 = vsub.f32 %v3328_v41, %v3331_v15  ;;  %v840_v31 = vmul.f32 16.0, %v832_v22  ;;  %v1024_v8 = vsub.f32 %v3328_v41, %v3332_v9 }
 0x501   : > { %v1632_v51 = vpop.eup %1631  ;;  %v656_v50 = vsel %vm632_vm8, %v648_v5, 0.0  ;;  %v752_v4 = vsel %vm728_vm11, %v744_v58, 0.0  ;;  %v644_v29 = vsub.f32 %v3334_v56, %v3333_v62  ;;  %vm920_vm10 = vcmp.gt.f32.partialorder %v3331_v15, -5e+29 }
 0x502   : > { %v1259_v32 = vsel %vm1211_vm6, %v1632_v51, 0.0  ;;  %v550_v40 = vmul.f32 16.0, %v542_v59  ;;  %583 = vadd.xlane.f32.xlu1 %v3310_v7  ;;  %577 = vadd.xlane.f32.xlu0 %v3313_v13  ;;  %v665_v18 = vmul.f32 1.442695, %v656_v50  ;;  %v761_v14 = vmul.f32 1.442695, %v752_v4 }
 0x503   : > { %v2689_v53 = vadd.f32 %v1259_v32, %v1171_v54  ;;  %v936_v43 = vmul.f32 16.0, %v928_v63  ;;  %vm824_vm6 = vcmp.gt.f32.partialorder %v3330_v47, -5e+29  ;;  %v1032_v2 = vmul.f32 16.0, %v1024_v8  ;;  %v3336_v51 = vld [vmem:[#allocation25_spill] sm:$0xff] }
 0x504   : > { %v565_v57 = vmul.f32 1.442695, %v550_v40  ;;  %v848_v0 = vsel %vm824_vm6, %v840_v31, 0.0  ;;  %v1120_v34 = vsub.f32 %v3328_v41, %v3335_v17  ;;  %v652_v59 = vmul.f32 16.0, %v644_v29  ;;  %v3337_v32 = vld [vmem:[#allocation29_spill] sm:$0xff] }
 0x505   : > { %v944_v27 = vsel %vm920_vm10, %v936_v43, 0.0  ;;  %v857_v6 = vmul.f32 1.442695, %v848_v0  ;;  %v740_v54 = vsub.f32 %v3334_v56, %v3336_v51  ;;  %v836_v40 = vsub.f32 %v3334_v56, %v3337_v32 }
 0x506   : > { %1635 = vpow2.f32 %v565_v57  ;;  %581 = vadd.xlane.f32.xlu0 %v3316_v60  ;;  %vm1016_vm2 = vcmp.gt.f32.partialorder %v3332_v9, -5e+29  ;;  %v953_v7 = vmul.f32 1.442695, %v944_v27  ;;  %v932_v44 = vsub.f32 %v3334_v56, %v3338_v23  ;;  %v3340_v60 = vld [vmem:[#allocation20_spill] sm:$0xff] }
 0x507   : > { %1637 = vpow2.f32 %v665_v18  ;;  %vm636_vm0 = vcmp.gt.f32.partialorder %v3333_v62, -5e+29  ;;  %v1040_v13 = vsel %vm1016_vm2, %v1032_v2, 0.0  ;;  %v1128_v57 = vmul.f32 16.0, %v1120_v34 }
 0x508   : > { %v1634_v21 = vpop.eup %1633  ;;  %1639 = vpow2.f32 %v761_v14  ;;  %v1028_v52 = vsub.f32 %v3334_v56, %v3339_v37  ;;  %vm637_vm9 = vcmp.gt.f32.partialorder %v3340_v60, -5e+29  ;;  %v748_v49 = vmul.f32 16.0, %v740_v54 }
 0x509   : > { %v573_v35 = vsel %vm453_vm12, %v1634_v21, 0.0  ;;  %1641 = vpow2.f32 %v857_v6  ;;  %v660_v21 = vsel %vm636_vm0, %v652_v59, 0.0  ;;  %vm733_vm7 = vcmp.gt.f32.partialorder %v3342_v3, -5e+29  ;;  %v3343_v6 = vld [vmem:[#allocation27_spill] sm:$0xff] }
 0x50a   : > { %585 = vadd.xlane.f32.xlu0 %v3323_v55  ;;  %587 = vadd.xlane.f32.xlu1 %v573_v35  ;;  %v1124_v35 = vsub.f32 %v3334_v56, %v3341_v26  ;;  %vm1112_vm5 = vcmp.gt.f32.partialorder %v3335_v17, -5e+29  ;;  %v844_v36 = vmul.f32 16.0, %v836_v40  ;;  %v645_v55 = vsub.f32 %v2644_v38, %v3340_v60 }
 0x50b   : > { %1643 = vpow2.f32 %v953_v7  ;;  %v940_v39 = vmul.f32 16.0, %v932_v44  ;;  %vm732_vm4 = vcmp.gt.f32.partialorder %v3336_v51, -5e+29  ;;  %v1136_v33 = vsel %vm1112_vm5, %v1128_v57, 0.0 }
 0x50c   : > { %v673_v11 = vmul.f32 1.442695, %v660_v21  ;;  %v1036_v5 = vmul.f32 16.0, %v1028_v52  ;;  %vm828_vm15 = vcmp.gt.f32.partialorder %v3337_v32, -5e+29  ;;  %v756_v22 = vsel %vm732_vm4, %v748_v49, 0.0 }
 0x50d   : > { %vm924_vm3 = vcmp.gt.f32.partialorder %v3338_v23, -5e+29  ;;  %v1132_v50 = vmul.f32 16.0, %v1124_v35  ;;  %vm3183_vm12 = vcmp.gt.f32.partialorder %v3339_v37, -5e+29  ;;  %v852_v4 = vsel %vm828_vm15, %v844_v36, 0.0 }
 0x50e   : > { %vm3182_vm14 = vcmp.gt.f32.partialorder %v3341_v26, -5e+29  ;;  %v653_v31 = vmul.f32 16.0, %v645_v55  ;;  %v1145_v18 = vmul.f32 1.442695, %v1136_v33  ;;  %v948_v14 = vsel %vm924_vm3, %v940_v39, 0.0 }
 0x50f   : > { %v769_v29 = vmul.f32 1.442695, %v756_v22  ;;  %v1044_v0 = vsel %vm3183_vm12, %v1036_v5, 0.0  ;;  %v865_v2 = vmul.f32 1.442695, %v852_v4  ;;  %v1140_v34 = vsel %vm3182_vm14, %v1132_v50, 0.0 }
 0x510   : > { %v1636_v20 = vpop.eup %1635  ;;  %v837_v59 = vsub.f32 %v2644_v38, %v3343_v6  ;;  %vm829_vm13 = vcmp.gt.f32.partialorder %v3343_v6, -5e+29  ;;  %v961_v54 = vmul.f32 1.442695, %v948_v14  ;;  %v661_v16 = vsel %vm637_vm9, %v653_v31, 0.0  ;;  %v3345_v49 = vld [vmem:[#allocation22_spill] sm:$0xff] }
 0x511   : > { %v574_v30 = vsel %vm454_vm1, %v1636_v20, 0.0  ;;  %v1049_v20 = vmul.f32 1.442695, %v1040_v13  ;;  %v1638_v58 = vpop.eup %1637  ;;  %v1216_v7 = vsub.f32 %v3328_v41, %v2631_v19  ;;  %v1057_v45 = vmul.f32 1.442695, %v1044_v0  ;;  %v3344_v13 = vld [vmem:[#allocation31_spill] sm:$0xff] }
 0x512   : > { %589 = vadd.xlane.f32.xlu0 %v574_v30  ;;  %v741_v30 = vsub.f32 %v2644_v38, %v3342_v3  ;;  %v1640_v63 = vpop.eup %1639  ;;  %v680_v8 = vsel %vm632_vm8, %v1638_v58, 0.0  ;;  %vm925_vm1 = vcmp.gt.f32.partialorder %v3344_v13, -5e+29  ;;  %v1153_v52 = vmul.f32 1.442695, %v1140_v34  ;;  %v3347_v50 = vld [vmem:[#allocation35_spill] sm:$0xff] }
 0x513   : > { %1645 = vpow2.f32 %v1049_v20  ;;  %v776_v27 = vsel %vm728_vm11, %v1640_v63, 0.0  ;;  %v1642_v40 = vpop.eup %1641  ;;  %vm638_vm8 = vcmp.gt.f32.partialorder %v3345_v49, -5e+29  ;;  %v675_v35 = vmul.f32 1.442695, %v661_v16  ;;  %v3346_v20 = vld [vmem:[#allocation26_spill] sm:$0xff] }
 0x514   : > { %v749_v43 = vmul.f32 16.0, %v741_v30  ;;  %1647 = vpow2.f32 %v673_v11  ;;  %v784_v57 = vadd.f32 %v776_v27, %v680_v8  ;;  %v845_v36 = vmul.f32 16.0, %v837_v59  ;;  %v3348_v4 = vld [vmem:[#allocation45_spill] sm:$0xff]  ;;  %v3349_v14 = vld [vmem:[#allocation39_spill] sm:$0xff]  ;;  %v3350_v16 = vld [vmem:[#allocation30_spill] sm:$0xff] }
 0x515   : > { %1649 = vpow2.f32 %v1145_v18  ;;  %v1644_v21 = vpop.eup %1643  ;;  %v933_v55 = vsub.f32 %v2644_v38, %v3344_v13  ;;  %vm734_vm11 = vcmp.gt.f32.partialorder %v3346_v20, -5e+29  ;;  %v872_v39 = vsel %vm824_vm6, %v1642_v40, 0.0 }
 0x516   : > { %v757_v44 = vsel %vm733_vm7, %v749_v43, 0.0  ;;  %1651 = vpow2.f32 %v769_v29  ;;  %v646_v33 = vsub.f32 %v2674_v61, %v3345_v49  ;;  %v1224_v11 = vmul.f32 16.0, %v1216_v7 }
 0x517   : > { %1653 = vpow2.f32 %v865_v2  ;;  %v771_v30 = vmul.f32 1.442695, %v757_v44  ;;  %v1220_v5 = vsub.f32 %v3334_v56, %v2650_v10  ;;  %v742_v22 = vsub.f32 %v2674_v61, %v3346_v20 }
 0x518   : > { %1655 = vpow2.f32 %v961_v54  ;;  %vm1021_vm14 = vcmp.gt.f32.partialorder %v3347_v50, -5e+29  ;;  %v880_v63 = vadd.f32 %v872_v39, %v784_v57  ;;  %v968_v47 = vsel %vm920_vm10, %v1644_v21, 0.0 }
 0x519   : > { %1657 = vpow2.f32 %v1057_v45  ;;  %vm3188_vm6 = vcmp.gt.f32.partialorder %v3349_v14, -5e+29  ;;  %v853_v43 = vsel %vm829_vm13, %v845_v36, 0.0  ;;  %v941_v8 = vmul.f32 16.0, %v933_v55 }
 0x51a   : > { %1659 = vpow2.f32 %v1153_v52  ;;  %v1029_v29 = vsub.f32 %v2644_v38, %v3347_v50  ;;  %vm3184_vm12 = vcmp.gt.f32.partialorder %v2631_v19, -5e+29  ;;  %v1125_v15 = vsub.f32 %v2644_v38, %v3349_v14 }
 0x51b   : > { %1661 = vpow2.f32 %v675_v35  ;;  %v654_v27 = vmul.f32 16.0, %v646_v33  ;;  %v1232_v2 = vsel %vm3184_vm12, %v1224_v11, 0.0  ;;  %v1228_v34 = vmul.f32 16.0, %v1220_v5 }
 0x51c   : > { %1663 = vpow2.f32 %v771_v30  ;;  %v1221_v59 = vsub.f32 %v2644_v38, %v2576_v1  ;;  %v750_v54 = vmul.f32 16.0, %v742_v22  ;;  %vm830_vm10 = vcmp.gt.f32.partialorder %v3350_v16, -5e+29 }
 0x51d   : > { %v1646_v18 = vpop.eup %1645  ;;  %v2827_v40 = vadd.f32 %v968_v47, %v880_v63  ;;  %v867_v44 = vmul.f32 1.442695, %v853_v43  ;;  %v949_v21 = vsel %vm925_vm1, %v941_v8, 0.0  ;;  %v1037_v35 = vmul.f32 16.0, %v1029_v29  ;;  %v3351_v47 = vld [vmem:[#allocation34_spill] sm:$0xff] }
 0x51e   : > { %v1648_v0 = vpop.eup %1647  ;;  %v2831_v7 = vsel %vm1016_vm2, %v1646_v18, 0.0  ;;  %v838_v36 = vsub.f32 %v2674_v61, %v3350_v16  ;;  %v1241_v39 = vmul.f32 1.442695, %v1232_v2  ;;  %vm3185_vm12 = vcmp.gt.f32.partialorder %v2650_v10, -5e+29  ;;  %v3353_v10 = vld [vmem:[#allocation42_spill] sm:$0xff] }
 0x51f   : > { %v1650_v57 = vpop.eup %1649  ;;  %v2835_v52 = vsel %vm636_vm0, %v1648_v0, 0.0  ;;  %v1133_v9 = vmul.f32 16.0, %v1125_v15  ;;  %v662_v30 = vsel %vm638_vm8, %v654_v27, 0.0  ;;  %v1236_v62 = vsel %vm3185_vm12, %v1228_v34, 0.0 }
 0x520   : > { %v1652_v55 = vpop.eup %1651  ;;  %v1229_v5 = vmul.f32 16.0, %v1221_v59  ;;  %v758_v22 = vsel %vm734_vm11, %v750_v54, 0.0  ;;  %vm926_vm0 = vcmp.gt.f32.partialorder %v3351_v47, -5e+29  ;;  %1665 = vpow2.f32 %v867_v44  ;;  %v3352_v54 = vld [vmem:[#allocation38_spill] sm:$0xff] }
 0x521   : > { %v2844_v33 = vpop.eup %1653  ;;  %v963_v18 = vmul.f32 1.442695, %v949_v21  ;;  %v1045_v8 = vsel %vm1021_vm14, %v1037_v35, 0.0  ;;  %v677_v29 = vmul.f32 1.442695, %v662_v30  ;;  %v846_v0 = vmul.f32 16.0, %v838_v36 }
 0x522   : > { %v2853_v63 = vpop.eup %1655  ;;  %v934_v15 = vsub.f32 %v2674_v61, %v3351_v47  ;;  %vm1213_vm12 = vcmp.gt.f32.partialorder %v2576_v1, -5e+29  ;;  %v780_v2 = vsel %vm732_vm4, %v1652_v55, 0.0  ;;  %v773_v34 = vmul.f32 1.442695, %v758_v22 }
 0x523   : > { %v2860_v43 = vpop.eup %1657  ;;  %1667 = vpow2.f32 %v1241_v39  ;;  %v1237_v21 = vsel %vm1213_vm12, %v1229_v5, 0.0  ;;  %v1249_v36 = vmul.f32 1.442695, %v1236_v62  ;;  %v1059_v30 = vmul.f32 1.442695, %v1045_v8 }
 0x524   : > { %v2866_v27 = vpop.eup %1659  ;;  %1669 = vpow2.f32 %v963_v18  ;;  %v1030_v51 = vsub.f32 %v2674_v61, %v3352_v54  ;;  %v942_v22 = vmul.f32 16.0, %v934_v15  ;;  %vm1118_vm4 = vcmp.gt.f32.partialorder %v3353_v10, -5e+29 }
 0x525   : > { %v1662_v59 = vpop.eup %1661  ;;  %1671 = vpow2.f32 %v677_v29  ;;  %v1251_v39 = vmul.f32 1.442695, %v1237_v21  ;;  %v1126_v62 = vsub.f32 %v2674_v61, %v3353_v10  ;;  %v2896_v15 = vadd.f32 %v2831_v7, %v2827_v40 }
 0x526   : > { %v1664_v35 = vpop.eup %1663  ;;  %1673 = vpow2.f32 %v773_v34  ;;  %v950_v60 = vsel %vm926_vm0, %v942_v22, 0.0 }
 0x527   : > { %v781_v18 = vsel %vm733_vm7, %v1664_v35, 0.0  ;;  %v1134_v40 = vmul.f32 16.0, %v1126_v62  ;;  %vm1214_vm7 = vcmp.gt.f32.partialorder %v2615_v42, -5e+29 }
 0x52a   : > { %v1666_v3 = vpop.eup %1665 }
 0x52d   : > { %v2912_v21 = vpop.eup %1667 }
 0x56b   : > { %v2805_v58 = vpop.xlane.xlu1 %1291 }
 0x56c   : > { %v1313_v31 = vsub.f32 %v3348_v4, %v2805_v58  ;;  %vm3186_vm2 = vcmp.gt.f32.partialorder %v2805_v58, -5e+29 }
 0x56e   : > { %v1321_v45 = vmul.f32 16.0, %v1313_v31 }
 0x570   : > { %v1329_v4 = vsel %vm3186_vm2, %v1321_v45, 0.0  ;;  %vm1022_vm2 = vcmp.gt.f32.partialorder %v3352_v54, -5e+29 }
 0x571   : > { %v1339_v45 = vmul.f32 1.442695, %v1329_v4 }
 0x573   : > { %v2849_v11 = vpop.xlane.xlu0 %1293  ;;  %1675 = vpow2.f32 %v1339_v45 }
 0x574   : > { %v1314_v31 = vsub.f32 %v2334_v48, %v2849_v11  ;;  %v1141_v48 = vsel %vm3188_vm6, %v1133_v9, 0.0  ;;  %v854_v9 = vsel %vm830_vm10, %v846_v0, 0.0  ;;  %vm1306_vm6 = vcmp.gt.f32.partialorder %v2849_v11, -5e+29 }
 0x575   : > { %v1155_v55 = vmul.f32 1.442695, %v1141_v48  ;;  %1677 = vpow2.f32 %v1249_v36  ;;  %v869_v29 = vmul.f32 1.442695, %v854_v9  ;;  %v1038_v0 = vmul.f32 16.0, %v1030_v51 }
 0x576   : > { %v1322_v44 = vmul.f32 16.0, %v1314_v31  ;;  %v685_v31 = vsel %vm637_vm9, %v1662_v59, 0.0  ;;  %v2900_v48 = vsel %vm1112_vm5, %v1650_v57, 0.0  ;;  %1679 = vpow2.f32 %v1059_v30  ;;  %v1670_v30 = vpop.eup %1669 }
 0x577   : > { %v789_v45 = vadd.f32 %v781_v18, %v685_v31  ;;  %1681 = vpow2.f32 %v1155_v55  ;;  %v965_v57 = vmul.f32 1.442695, %v950_v60  ;;  %v1222_v36 = vsub.f32 %v2674_v61, %v2615_v42  ;;  %v1672_v22 = vpop.eup %1671 }
 0x578   : > { %v1330_v5 = vsel %vm1306_vm6, %v1322_v44, 0.0  ;;  %1683 = vpow2.f32 %v1251_v39  ;;  %v1046_v44 = vsel %vm1022_vm2, %v1038_v0, 0.0  ;;  %v876_v51 = vsel %vm828_vm15, %v2844_v33, 0.0  ;;  %v1674_v62 = vpop.eup %1673 }
 0x579   : > { %v1341_v34 = vmul.f32 1.442695, %v1330_v5  ;;  %1685 = vpow2.f32 %v869_v29  ;;  %v2926_v55 = vsel %vm924_vm3, %v2853_v63, 0.0  ;;  %v1061_v6 = vmul.f32 1.442695, %v1046_v44 }
 0x57a   : > { %v1142_v39 = vsel %vm1118_vm4, %v1134_v40, 0.0  ;;  %v973_v18 = vsel %vm925_vm1, %v1670_v30, 0.0  ;;  %vm3354_vm15 = vcmp.gt.f32.partialorder %v2805_v58, -5e+29  ;;  %v1168_v47 = vadd.f32 %v2900_v48, %v2896_v15 }
 0x57b   : > { %v2886_v4 = vpop.xlane.xlu1 %1287  ;;  %1687 = vpow2.f32 %v1341_v34  ;;  %v1157_v34 = vmul.f32 1.442695, %v1142_v39 }
 0x57c   : > { %v1311_v8 = vsub.f32 %v2324_v12, %v2886_v4  ;;  %v788_v12 = vadd.f32 %v780_v2, %v2835_v52  ;;  %vm1303_vm9 = vcmp.gt.f32.partialorder %v2886_v4, -5e+29  ;;  %v877_v2 = vsel %vm829_vm13, %v1666_v3, 0.0 }
 0x57d   : > { %v885_v9 = vadd.f32 %v877_v2, %v789_v45  ;;  %v1676_v33 = vpop.eup %1675 }
 0x57e   : > { %v1319_v59 = vmul.f32 16.0, %v1311_v8  ;;  %v884_v5 = vadd.f32 %v876_v51, %v788_v12  ;;  %v1230_v8 = vmul.f32 16.0, %v1222_v36  ;;  %v686_v12 = vsel %vm638_vm8, %v1672_v22, 0.0 }
 0x57f   : > { %v2908_v7 = vpop.xlane.xlu1 %1295  ;;  %v2942_v29 = vpop.eup %1677  ;;  %v981_v3 = vadd.f32 %v973_v18, %v885_v9  ;;  %v1353_v40 = vsel %vm3354_vm15, %v1676_v33, 0.0  ;;  %vm3356_vm8 = vcmp.gt.f32.partialorder %v3349_v14, -5e+29 }
 0x580   : > { %v1327_v17 = vsel %vm1303_vm9, %v1319_v59, 0.0  ;;  %v1315_v52 = vsub.f32 %v2330_v25, %v2908_v7  ;;  %vm1307_vm5 = vcmp.gt.f32.partialorder %v2908_v7, -5e+29  ;;  %v1680_v59 = vpop.eup %1679  ;;  %v1238_v58 = vsel %vm1214_vm7, %v1230_v8, 0.0 }
 0x581   : > { %v1335_v35 = vmul.f32 1.442695, %v1327_v17  ;;  %v1682_v13 = vpop.eup %1681  ;;  %v1069_v36 = vsel %vm1021_vm14, %v1680_v59, 0.0  ;;  %v1361_v22 = vadd.f32 %v1353_v40, %v2608_v28  ;;  %vm3355_vm14 = vcmp.gt.f32.partialorder %v3339_v37, -5e+29 }
 0x582   : > { %v1323_v25 = vmul.f32 16.0, %v1315_v52  ;;  %v2957_v44 = vpop.eup %1683  ;;  %v1077_v39 = vadd.f32 %v1069_v36, %v981_v3  ;;  %v980_v3 = vadd.f32 %v2926_v55, %v884_v5  ;;  %v3359_v36 = vld [vmem:[#allocation16_spill] sm:$0xff] }
 0x583   : > { %1689 = vpow2.f32 %v1335_v35  ;;  %v2932_v32 = vpop.xlane.xlu1 %1299  ;;  %v2934_v23 = vpop.xlane.xlu0 %1289 }
 0x584   : > { %1691 = vpow2.f32 %v965_v57  ;;  %v1331_v63 = vsel %vm1307_vm5, %v1323_v25, 0.0  ;;  %v1317_v31 = vsub.f32 %v2644_v38, %v2932_v32  ;;  %v1312_v60 = vsub.f32 %v3328_v41, %v2934_v23  ;;  %v1686_v35 = vpop.eup %1685 }
 0x585   : > { %v1343_v0 = vmul.f32 1.442695, %v1331_v63  ;;  %v782_v38 = vsel %vm734_vm11, %v1674_v62, 0.0  ;;  %1693 = vpow2.f32 %v1061_v6  ;;  %vm1309_vm3 = vcmp.gt.f32.partialorder %v2932_v32, -5e+29  ;;  %v1688_v25 = vpop.eup %1687 }
 0x586   : > { %v1325_v45 = vmul.f32 16.0, %v1317_v31  ;;  %v1320_v17 = vmul.f32 16.0, %v1312_v60  ;;  %vm1304_vm13 = vcmp.gt.f32.partialorder %v2934_v23, -5e+29  ;;  %v790_v30 = vadd.f32 %v782_v38, %v686_v12 }
 0x587   : > { %1695 = vpow2.f32 %v1343_v0  ;;  %v2953_v41 = vpop.xlane.xlu1 %575  ;;  %v2955_v57 = vpop.xlane.xlu0 %1297  ;;  %v1253_v62 = vmul.f32 1.442695, %v1238_v58  ;;  %v878_v28 = vsel %vm830_vm10, %v1686_v35, 0.0  ;;  %v1354_v16 = vsel %vm1306_vm6, %v1688_v25, 0.0 }
 0x588   : > { %v1333_v49 = vsel %vm1309_vm3, %v1325_v45, 0.0  ;;  %v1316_v20 = vsub.f32 %v3334_v56, %v2955_v57  ;;  %v1328_v2 = vsel %vm1304_vm13, %v1320_v17, 0.0  ;;  %1697 = vpow2.f32 %v1157_v34 }
 0x589   : > { %v1347_v52 = vmul.f32 1.442695, %v1333_v49  ;;  %v1337_v51 = vmul.f32 1.442695, %v1328_v2  ;;  %vm1308_vm1 = vcmp.gt.f32.partialorder %v2955_v57, -5e+29  ;;  %v886_v60 = vadd.f32 %v878_v28, %v790_v30 }
 0x58a   : > { %v1324_v9 = vmul.f32 16.0, %v1316_v20  ;;  %v1068_v34 = vsel %vm3355_vm14, %v2860_v43, 0.0  ;;  %vm3357_vm6 = vcmp.gt.f32.partialorder %v2631_v19, -5e+29  ;;  %v1362_v40 = vadd.f32 %v1354_v16, %v2648_v46 }
 0x58b   : > { %1699 = vpow2.f32 %v1347_v52  ;;  %v2972_v56 = vpop.xlane.xlu1 %579  ;;  %v2974_v6 = vpop.xlane.xlu0 %1301  ;;  %v1256_v11 = vsel %vm3357_vm6, %v2912_v21, 0.0  ;;  %v1076_v17 = vadd.f32 %v1068_v34, %v980_v3  ;;  %vm3358_vm10 = vcmp.gt.f32.partialorder %v3341_v26, -5e+29 }
 0x58c   : > { %1701 = vpow2.f32 %v1337_v51  ;;  %v1332_v50 = vsel %vm1308_vm1, %v1324_v9, 0.0  ;;  %v1369_v63 = vadd.f32 %v1361_v22, %v2972_v56  ;;  %v1318_v0 = vsub.f32 %v2674_v61, %v2974_v6 }
 0x58d   : > { %v1690_v33 = vpop.eup %1689  ;;  %v1345_v8 = vmul.f32 1.442695, %v1332_v50  ;;  %v1165_v61 = vsel %vm3356_vm8, %v1682_v13, 0.0  ;;  %vm1310_vm11 = vcmp.gt.f32.partialorder %v2974_v6, -5e+29  ;;  %v1164_v20 = vsel %vm3358_vm10, %v2866_v27, 0.0 }
 0x58e   : > { %v1692_v31 = vpop.eup %1691  ;;  %v1351_v18 = vsel %vm1303_vm9, %v1690_v33, 0.0  ;;  %1703 = vrcp.f32 %v1369_v63  ;;  %v1326_v4 = vmul.f32 16.0, %v1318_v0  ;;  %v1173_v5 = vadd.f32 %v1165_v61, %v1077_v39 }
 0x58f   : > { %v1359_v59 = vadd.f32 %v1351_v18, %v2677_v24  ;;  %1705 = vpow2.f32 %v1345_v8  ;;  %v2992_v45 = vpop.xlane.xlu0 %577  ;;  %v1694_v12 = vpop.eup %1693  ;;  %v974_v37 = vsel %vm926_vm0, %v1692_v31, 0.0  ;;  %v1261_v35 = vsel %vm1213_vm12, %v2957_v44, 0.0 }
 0x590   : > { %1707 = vpow2.f32 %v1253_v62  ;;  %v1334_v43 = vsel %vm1310_vm11, %v1326_v4, 0.0  ;;  %v982_v14 = vadd.f32 %v974_v37, %v886_v60  ;;  %v584_v58 = vpop.xlane.xlu1 %583  ;;  %v1264_v52 = vadd.f32 %v1256_v11, %v1168_v47 }
 0x591   : > { %v1367_v55 = vadd.f32 %v1359_v59, %v2953_v41  ;;  %v1696_v24 = vpop.eup %1695  ;;  %v1349_v13 = vmul.f32 1.442695, %v1334_v43  ;;  %v1269_v15 = vadd.f32 %v1261_v35, %v1173_v5  ;;  %vm3360_vm0 = vcmp.gt.f32.partialorder %v3359_v36, -5e+29  ;;  %v3364_v35 = vld [vmem:[#allocation8_spill] sm:$0xff] }
 0x592   : > { %v1355_v38 = vsel %vm1307_vm5, %v1696_v24, 0.0  ;;  %v1698_v21 = vpop.eup %1697  ;;  %v1260_v26 = vsel %vm3360_vm0, %v2942_v29, 0.0  ;;  %v1172_v51 = vadd.f32 %v1164_v20, %v1076_v17  ;;  %v3361_v24 = vld [vmem:[#allocation3_spill] sm:$0xff] }
 0x593   : > { %1709 = vrcp.f32 %v1367_v55  ;;  %v1363_v49 = vadd.f32 %v1355_v38, %v2689_v53  ;;  %v582_v19 = vpop.xlane.xlu0 %581  ;;  %v1070_v53 = vsel %vm1022_vm2, %v1694_v12, 0.0  ;;  %v1166_v32 = vsel %vm1118_vm4, %v1698_v21, 0.0 }
 0x594   : > { %1711 = vpow2.f32 %v1349_v13  ;;  %v1370_v7 = vadd.f32 %v1362_v40, %v582_v19  ;;  %v1078_v30 = vadd.f32 %v1070_v53, %v982_v14  ;;  %v1268_v39 = vadd.f32 %v1260_v26, %v1172_v51  ;;  %v3362_v40 = vld [vmem:[#allocation4_spill] sm:$0xff] }
 0x595   : > { %v1700_v46 = vpop.eup %1699  ;;  %v1371_v2 = vadd.f32 %v1363_v49, %v584_v58  ;;  %vm423_vm12 = vcmp.lt.s32.totalorder %v3361_v24, 8  ;;  %vm1423_vm2 = vcmask 7168   ;;  %vm421_vm4 = vcmp.lt.s32.totalorder %v3362_v40, 8 }
 0x596   : > { %v1702_v48 = vpop.eup %1701  ;;  %v1357_v27 = vsel %vm1309_vm3, %v1700_v46, 0.0  ;;  %1713 = vrcp.f32 %v1370_v7  ;;  %v1174_v63 = vadd.f32 %v1166_v32, %v1078_v30 }
 0x597   : > { %v1352_v1 = vsel %vm1304_vm13, %v1702_v48, 0.0  ;;  %1715 = vrcp.f32 %v1371_v2  ;;  %v1365_v44 = vadd.f32 %v1357_v27, %v1269_v15  ;;  %v588_v54 = vpop.xlane.xlu1 %587  ;;  %v586_v31 = vpop.xlane.xlu0 %585  ;;  %v3365_v27 = vld [vmem:[#allocation6_spill] sm:$0xff] }
 0x598   : > { %v1704_v9 = vpop.eup %1703  ;;  %v1360_v22 = vadd.f32 %v1352_v1, %v1264_v52  ;;  %vm422_vm5 = vcmp.lt.s32.totalorder %v3365_v27, 8  ;;  %v3366_v1 = vld [vmem:[#allocation10_spill] sm:$0xff] }
 0x599   : > { %v1706_v25 = vpop.eup %1705  ;;  %v1380_v62 = vmul.f32 %v1704_v9, %v2972_v56  ;;  %v1373_v33 = vadd.f32 %v1365_v44, %v588_v54  ;;  %vm427_vm15 = vcmp.lt.s32.totalorder %v3366_v1, 8 }
 0x59a   : > { %v1708_v29 = vpop.eup %1707  ;;  %v1356_v50 = vsel %vm1308_vm1, %v1706_v25, 0.0  ;;  %v1368_v23 = vadd.f32 %v1360_v22, %v2992_v45  ;;  %v3367_v25 = vld [vmem:[#allocation7_spill] sm:$0xff] }
 0x59b   : > { %1717 = vlog2.f32 %v1380_v62  ;;  %v1364_v28 = vadd.f32 %v1356_v50, %v1268_v39  ;;  %v1262_v10 = vsel %vm1214_vm7, %v1708_v29, 0.0  ;;  %vm425_vm7 = vcmp.lt.s32.totalorder %v3364_v35, 8  ;;  %v3368_v50 = vld [vmem:[#allocation9_spill] sm:$0xff] }
 0x59c   : > { %1719 = vrcp.f32 %v1368_v23  ;;  %v1270_v60 = vadd.f32 %v1262_v10, %v1174_v63  ;;  %vm426_vm3 = vcmp.lt.s32.totalorder %v3367_v25, 8  ;;  %vm428_vm13 = vcmp.lt.s32.totalorder %v3368_v50, 8 }
 0x59d   : > { %v1710_v18 = vpop.eup %1709  ;;  %1721 = vrcp.f32 %v1373_v33  ;;  %v1372_v56 = vadd.f32 %v1364_v28, %v586_v31 }
 0x59e   : > { %v1376_v8 = vmul.f32 %v1710_v18, %v2953_v41  ;;  %v1712_v0 = vpop.eup %1711 }
 0x59f   : > { %v1358_v57 = vsel %vm1310_vm11, %v1712_v0, 0.0  ;;  %v590_v3 = vpop.xlane.xlu0 %589 }
 0x5a0   : > { %1723 = vlog2.f32 %v1376_v8  ;;  %v1714_v34 = vpop.eup %1713  ;;  %v1366_v59 = vadd.f32 %v1358_v57, %v1270_v60 }
 0x5a1   : > { %1725 = vrcp.f32 %v1372_v56  ;;  %v1716_v16 = vpop.eup %1715  ;;  %v1382_v4 = vmul.f32 %v1714_v34, %v582_v19 }
 0x5a2   : > { %v1384_v61 = vmul.f32 %v1716_v16, %v584_v58  ;;  %v1374_v41 = vadd.f32 %v1366_v59, %v590_v3  ;;  %v3363_v58 = vld [vmem:[#allocation5_spill] sm:$0xff] }
 0x5a3   : > { %1727 = vlog2.f32 %v1382_v4  ;;  %vm424_vm9 = vcmp.lt.s32.totalorder %v3363_v58, 8 }
 0x5a4   : > { %1729 = vlog2.f32 %v1384_v61 }
 0x5a5   : > { %v1718_v12 = vpop.eup %1717  ;;  %1731 = vrcp.f32 %v1374_v41 }
 0x5a6   : > { %v1720_v42 = vpop.eup %1719  ;;  %v1396_v55 = vmul.f32 0.6931472, %v1718_v12 }
 0x5a7   : > { %v1722_v37 = vpop.eup %1721  ;;  %v1378_v6 = vmul.f32 %v1720_v42, %v2992_v45 }
 0x5a8   : > { %v1409_v11 = vsub.f32 0.0, %v1396_v55  ;;  %v1388_v43 = vmul.f32 %v1722_v37, %v588_v54 }
 0x5a9   : > { %1733 = vlog2.f32 %v1378_v6 }
 0x5aa   : > { %v1724_v5 = vpop.eup %1723  ;;  %v1417_v13 = vsel %vm423_vm12, %v1409_v11, 0.0  ;;  %1735 = vlog2.f32 %v1388_v43 }
 0x5ab   : > { %v1726_v14 = vpop.eup %1725  ;;  %v1392_v38 = vmul.f32 0.6931472, %v1724_v5  ;;  %1426 = vst.msk [vmem:[%s3044_s9 + $0x10] sm:$0xff] %vm1423_vm2, %v1417_v13 }
 0x5ac   : > { %v1386_v45 = vmul.f32 %v1726_v14, %v586_v31 }
 0x5ad   : > { %v1407_v47 = vsub.f32 0.0, %v1392_v38  ;;  %v1728_v17 = vpop.eup %1727 }
 0x5ae   : > { %1737 = vlog2.f32 %v1386_v45  ;;  %v1730_v49 = vpop.eup %1729  ;;  %v1398_v21 = vmul.f32 0.6931472, %v1728_v17 }
 0x5af   : > { %v1415_v19 = vsel %vm421_vm4, %v1407_v47, 0.0  ;;  %v1732_v20 = vpop.eup %1731  ;;  %v1400_v7 = vmul.f32 0.6931472, %v1730_v49 }
 0x5b0   : > { %1424 = vst.msk [vmem:[%s3044_s9] sm:$0xff] %vm1423_vm2, %v1415_v19  ;;  %v1410_v46 = vsub.f32 0.0, %v1398_v21  ;;  %v1390_v52 = vmul.f32 %v1732_v20, %v590_v3 }
 0x5b1   : > { %v1411_v2 = vsub.f32 0.0, %v1400_v7 }
 0x5b2   : > { %v1418_v15 = vsel %vm424_vm9, %v1410_v46, 0.0  ;;  %1739 = vlog2.f32 %v1390_v52 }
 0x5b3   : > { %v1734_v53 = vpop.eup %1733  ;;  %v1419_v48 = vsel %vm425_vm7, %v1411_v2, 0.0  ;;  %1427 = vst.msk [vmem:[%s3044_s9 + $0x18] sm:$0xff] %vm1423_vm2, %v1418_v15 }
 0x5b4   : > { %v1736_v36 = vpop.eup %1735  ;;  %1428 = vst.msk [vmem:[%s3044_s9 + $0x20] sm:$0xff] %vm1423_vm2, %v1419_v48  ;;  %v1394_v26 = vmul.f32 0.6931472, %v1734_v53 }
 0x5b5   : > { %v1404_v30 = vmul.f32 0.6931472, %v1736_v36 }
 0x5b6   : > { %v1408_v51 = vsub.f32 0.0, %v1394_v26 }
 0x5b7   : > { %v1413_v9 = vsub.f32 0.0, %v1404_v30 }
 0x5b8   : > { %v1738_v44 = vpop.eup %1737  ;;  %v1416_v22 = vsel %vm422_vm5, %v1408_v51, 0.0 }
 0x5b9   : > { %v1402_v54 = vmul.f32 0.6931472, %v1738_v44  ;;  %1425 = vst.msk [vmem:[%s3044_s9 + $0x8] sm:$0xff] %vm1423_vm2, %v1416_v22  ;;  %v1421_v39 = vsel %vm427_vm15, %v1413_v9, 0.0 }
 0x5ba   : > { %1430 = vst.msk [vmem:[%s3044_s9 + $0x30] sm:$0xff] %vm1423_vm2, %v1421_v39 }
 0x5bb   : > { %v1412_v62 = vsub.f32 0.0, %v1402_v54 }
 0x5bc   : > { %v1740_v33 = vpop.eup %1739 }
 0x5bd   : > { %v1420_v32 = vsel %vm426_vm3, %v1412_v62, 0.0  ;;  %v1406_v29 = vmul.f32 0.6931472, %v1740_v33 }
 0x5be   : > { %1429 = vst.msk [vmem:[%s3044_s9 + $0x28] sm:$0xff] %vm1423_vm2, %v1420_v32 }
 0x5bf   : > { %v1414_v23 = vsub.f32 0.0, %v1406_v29 }
 0x5c1   : > { %v1422_v63 = vsel %vm428_vm13, %v1414_v23, 0.0 }
 0x5c2   : > { %1431 = vst.msk [vmem:[%s3044_s9 + $0x38] sm:$0xff] %vm1423_vm2, %v1422_v63 }
 0x5c3 PF: > { %s14_s15 = sadd.s32 1, %s1747_s15  }
 0x5c4   : > { %p11_p4 = scmp.ge.s32.totalorder %s14_s15, 4  }
 0x5c6   :  { %13 = sbr.rel (!%p11_p4) target bundleno = 1 (0x1), region = 69 }

</bundles_post_ra>
